<compile_context>
chip_gen: v5e
topology: v5e:2x2
jax: 0.10.0
libtpu: 0.0.40
codegen_flags: <defaults>
</compile_context>

<pallas_src>
import functools
import math

import jax
import jax.numpy as jnp
from jax.experimental import pallas as pl
from jax.experimental.pallas import tpu as pltpu


def _layernorm(x, gamma, beta, eps=1e-5):
    # x: (R, E) f32, gamma/beta: (1, E) f32
    mean = jnp.mean(x, axis=-1, keepdims=True)
    var = jnp.mean((x - mean) ** 2, axis=-1, keepdims=True)
    inv = jax.lax.rsqrt(var + eps)
    return (x - mean) * inv * gamma + beta


def self_attn_block_kernel(
    xq_ref, xkv_ref,
    wq_ref, bq_ref, wkv_ref, bkv_ref,
    g1_ref, be1_ref,
    w1t_ref, b1_ref, w2_ref, b2_ref,
    g2_ref, be2_ref,
    o_ref,
    qh_s, kh_s, vh_s, attn_s,
    *, num_heads, kv_tile, ff_chunk,
):
    qi = pl.program_id(1)
    H = num_heads
    TQ, E = xq_ref.shape[1], xq_ref.shape[2]
    S = xkv_ref.shape[1]
    D = E // H
    scale = 1.0 / math.sqrt(D)

    # ---- K/V projection + head split, hoisted: runs once per batch row.
    # kh_s / vh_s persist across the qi grid axis (marked "arbitrary"), so
    # query tiles 1..n-1 reuse them instead of redoing 4*S*E^2 FLOPs each.
    @pl.when(qi == 0)
    def _():
        x_kv = xkv_ref[0]                                     # (S, E) bf16
        kv = jnp.dot(x_kv, wkv_ref[...],
                     preferred_element_type=jnp.float32) + bkv_ref[...]
        # TODO(synk): when D < 128 these per-head slices are lane-padded to
        # 128; pack multiple heads per 128-lane slab for full lane density.
        for h in range(H):
            lo = h * D
            kh_s[h] = kv[:, lo:lo + D].astype(jnp.bfloat16)
            vh_s[h] = kv[:, E + lo:E + lo + D].astype(jnp.bfloat16)

    # ---- Q projection for this query tile; 1/sqrt(D) folded into q once.
    x_q = xq_ref[0]                                            # (TQ, E) f32
    q = jnp.dot(x_q.astype(jnp.bfloat16), wq_ref[...],
                preferred_element_type=jnp.float32) + bq_ref[...]
    q = q * scale
    for h in range(H):
        qh_s[h] = q[:, h * D:(h + 1) * D].astype(jnp.bfloat16)
    qh = qh_s[...]                                             # (H, TQ, D) bf16

    # ---- Attention, tiled over the KV axis with online softmax: the
    # (H, TQ, S) f32 score tensor is never fully materialized.
    n_kv = S // kv_tile

    def kv_step(t, carry):
        m, l, acc = carry
        start = pl.multiple_of(t * kv_tile, kv_tile)
        kc = kh_s[:, pl.ds(start, kv_tile), :]                 # (H, TK, D) bf16
        vc = vh_s[:, pl.ds(start, kv_tile), :]
        s = jnp.einsum('hqd,hkd->hqk', qh, kc,
                       preferred_element_type=jnp.float32)     # (H, TQ, TK) f32
        m_new = jnp.maximum(m, jnp.max(s, axis=-1, keepdims=True))
        alpha = jnp.exp(m - m_new)
        p = jnp.exp(s - m_new)
        l_new = alpha * l + jnp.sum(p, axis=-1, keepdims=True)
        acc_new = alpha * acc + jnp.einsum(
            'hqk,hkd->hqd', p.astype(jnp.bfloat16), vc,
            preferred_element_type=jnp.float32)
        return m_new, l_new, acc_new

    m0 = jnp.full((H, TQ, 1), -jnp.inf, jnp.float32)
    l0 = jnp.zeros((H, TQ, 1), jnp.float32)
    a0 = jnp.zeros((H, TQ, D), jnp.float32)
    _, l, acc = jax.lax.fori_loop(0, n_kv, kv_step, (m0, l0, a0))
    o = acc * pl.reciprocal(l, approx=True)                    # (H, TQ, D) f32

    # Reassemble (TQ, E): head h occupies lanes [h*D, (h+1)*D) (matches
    # torch.cat of per-head outputs along the last dim).
    for h in range(H):
        attn_s[:, h * D:(h + 1) * D] = o[h]

    # ---- residual + LayerNorm 1 (f32)
    y1 = _layernorm(x_q + attn_s[...], g1_ref[...], be1_ref[...])
    y1_b = y1.astype(jnp.bfloat16)

    # ---- Feed-forward, rolled loop over 4E-dim chunks. W1 is shipped
    # transposed (4E, E) so the chunk is a sublane slice and dot_general
    # contracts last dims (no lane-dim dynamic slice, no in-kernel transpose).
    Eh = w1t_ref.shape[0]
    n_ff = Eh // ff_chunk

    def ff_step(c, ff):
        start = pl.multiple_of(c * ff_chunk, ff_chunk)
        w1c = w1t_ref[pl.ds(start, ff_chunk), :]               # (FC, E) bf16
        b1c = b1_ref[pl.ds(c, 1), :]                           # (1, FC) f32
        h1 = jax.lax.dot_general(
            y1_b, w1c, (((1,), (1,)), ((), ())),
            preferred_element_type=jnp.float32) + b1c          # (TQ, FC) f32
        h1 = jnp.maximum(h1, 0.0)
        w2c = w2_ref[pl.ds(start, ff_chunk), :]                # (FC, E) bf16
        return ff + jnp.dot(h1.astype(jnp.bfloat16), w2c,
                            preferred_element_type=jnp.float32)

    ff = jax.lax.fori_loop(0, n_ff, ff_step, jnp.zeros((TQ, E), jnp.float32))
    ff = ff + b2_ref[...]

    # ---- residual + LayerNorm 2 (f32)
    o_ref[0] = _layernorm(y1 + ff, g2_ref[...], be2_ref[...])


def self_attention_block(x, params, num_heads, *, q_tile=256, kv_tile=512,
                         ff_chunk=512, vmem_limit_bytes=None):
    """x: (B, S, E) float32; params: dict of f32 weights (see init_params).

    q_tile=256 targets the 2x256^2 MXU on v6e/v7x; use q_tile=128 on v5e.
    """
    B, S, E = x.shape
    Eh = 4 * E
    assert E % num_heads == 0
    D = E // num_heads
    TQ = min(q_tile, S)
    assert S % TQ == 0, "S must be a multiple of the query tile"
    TK = min(kv_tile, S)
    assert S % TK == 0, "S must be a multiple of the KV tile"
    FC = min(ff_chunk, Eh)
    assert Eh % FC == 0, "4*E must be a multiple of the FFN chunk"
    n_ff = Eh // FC

    if vmem_limit_bytes is None:
        # Generation-aware VMEM budget: ~56 MiB on v7x (64 MiB physical),
        # ~110 MiB on v5e/v6e (128 MiB physical).
        try:
            phys = pltpu.get_tpu_info().vmem_capacity_bytes
        except Exception:
            phys = 64 * 1024 * 1024  # conservative (v7x-sized) fallback
        vmem_limit_bytes = min(phys - 8 * 1024 * 1024, 110 * 1024 * 1024)

    bf = lambda w: w.astype(jnp.bfloat16)   # matmul weights shipped as bf16
    wkv = jnp.concatenate([params["wk"], params["wv"]], axis=1)   # (E, 2E)
    bkv = jnp.concatenate([params["bk"], params["bv"]], axis=1)   # (1, 2E)
    w1t = params["w1"].T                                          # (4E, E)
    b1c = params["b1"].reshape(n_ff, FC)

    kernel = functools.partial(self_attn_block_kernel, num_heads=num_heads,
                               kv_tile=TK, ff_chunk=FC)

    args = (
        x,                      # f32 stream: query rows / residual path
        bf(x),                  # bf16 stream: key/value rows (half the DMA)
        bf(params["wq"]), params["bq"],
        bf(wkv), bkv,
        params["g1"], params["be1"],
        bf(w1t), b1c, bf(params["w2"]), params["b2"],
        params["g2"], params["be2"],
    )

    def build(weight_pipeline_mode):
        def full(shp):
            kw = {}
            if weight_pipeline_mode is not None:
                kw["pipeline_mode"] = weight_pipeline_mode
            return pl.BlockSpec(shp, lambda b, qi: (0,) * len(shp), **kw)

        in_specs = [
            pl.BlockSpec((1, TQ, E), lambda b, qi: (b, qi, 0)),   # x f32 (query rows)
            pl.BlockSpec((1, S, E), lambda b, qi: (b, 0, 0)),     # x bf16 (K/V rows), fetched once per b
            full((E, E)), full((1, E)),                           # Wq, bq
            full((E, 2 * E)), full((1, 2 * E)),                   # Wkv, bkv (fused)
            full((1, E)), full((1, E)),                           # norm1 gamma, beta
            full((Eh, E)), full((n_ff, FC)),                      # W1^T, b1 (chunk-major)
            full((Eh, E)), full((1, E)),                          # W2, b2
            full((1, E)), full((1, E)),                           # norm2 gamma, beta
        ]
        return pl.pallas_call(
            kernel,
            out_shape=jax.ShapeDtypeStruct((B, S, E), jnp.float32),
            grid=(B, S // TQ),
            in_specs=in_specs,
            out_specs=pl.BlockSpec((1, TQ, E), lambda b, qi: (b, qi, 0)),
            scratch_shapes=[
                pltpu.VMEM((num_heads, TQ, D), jnp.bfloat16),   # q heads
                pltpu.VMEM((num_heads, S, D), jnp.bfloat16),    # k heads (persist over qi)
                pltpu.VMEM((num_heads, S, D), jnp.bfloat16),    # v heads (persist over qi)
                pltpu.VMEM((TQ, E), jnp.float32),               # attention output
            ],
            compiler_params=pltpu.CompilerParams(
                # qi must be "arbitrary": kh_s/vh_s carry across query tiles.
                dimension_semantics=("parallel", "arbitrary"),
                vmem_limit_bytes=vmem_limit_bytes),
        )

    try:
        # Single-buffer the fully-resident constant-index weights.
        return jax.block_until_ready(build(pl.Buffered(1))(*args))
    except Exception:
        # pipeline_mode=pl.Buffered(1) unsupported on this jax version;
        # fall back to default double-buffered weights (correctness identical).
        return build(None)(*args)


def init_params(key, E, num_heads):
    """Deterministic synthetic init (f32). Per-head Q/K/V weights are stacked
    column-wise so head h occupies columns [h*D:(h+1)*D] (matches torch.cat of
    per-head outputs along the last dim)."""
    Eh = 4 * E
    ks = jax.random.split(key, 10)
    s = 0.1
    return dict(
        wq=s * jax.random.normal(ks[0], (E, E), jnp.float32),
        bq=s * jax.random.normal(ks[1], (1, E), jnp.float32),
        wk=s * jax.random.normal(ks[2], (E, E), jnp.float32),
        bk=s * jax.random.normal(ks[3], (1, E), jnp.float32),
        wv=s * jax.random.normal(ks[4], (E, E), jnp.float32),
        bv=s * jax.random.normal(ks[5], (1, E), jnp.float32),
        g1=jnp.ones((1, E), jnp.float32),
        be1=jnp.zeros((1, E), jnp.float32),
        w1=s * jax.random.normal(ks[6], (E, Eh), jnp.float32),
        b1=s * jax.random.normal(ks[7], (1, Eh), jnp.float32),
        w2=s * jax.random.normal(ks[8], (Eh, E), jnp.float32),
        b2=s * jax.random.normal(ks[9], (1, E), jnp.float32),
        g2=jnp.ones((1, E), jnp.float32),
        be2=jnp.zeros((1, E), jnp.float32),
    )


def reference(x, p, num_heads):
    """Pure-JAX f32 reference mirroring the PyTorch forward."""
    B, S, E = x.shape
    D = E // num_heads
    q = x @ p["wq"] + p["bq"]
    k = x @ p["wk"] + p["bk"]
    v = x @ p["wv"] + p["bv"]
    outs = []
    for h in range(num_heads):
        qh, kh, vh = (t[..., h * D:(h + 1) * D] for t in (q, k, v))
        s = jnp.einsum("bqd,bkd->bqk", qh, kh) / jnp.sqrt(jnp.float32(D))
        a = jax.nn.softmax(s, axis=-1)
        outs.append(jnp.einsum("bqk,bkd->bqd", a, vh))
    x_attn = jnp.concatenate(outs, axis=-1)

    def ln(y, g, b, eps=1e-5):
        m = jnp.mean(y, -1, keepdims=True)
        va = jnp.mean((y - m) ** 2, -1, keepdims=True)
        return (y - m) / jnp.sqrt(va + eps) * g + b

    y1 = ln(x + x_attn, p["g1"], p["be1"])
    ff = jnp.maximum(y1 @ p["w1"] + p["b1"], 0.0) @ p["w2"] + p["b2"]
    return ln(y1 + ff, p["g2"], p["be2"])


if __name__ == "__main__":
    key = jax.random.PRNGKey(0)

    # --- small smoke test (matches the module's toy sizes) ---
    B, S, E, H = 2, 8, 32, 4   # batch, seq, embedding_dim, num_heads
    kx, kp, kx2, kp2 = jax.random.split(key, 4)
    x = jax.random.normal(kx, (B, S, E), jnp.float32)
    params = init_params(kp, E, H)
    out = jax.block_until_ready(self_attention_block(x, params, H))
    ref = reference(x, params, H)
    assert out.shape == (B, S, E)
    # bf16 matmuls + approx reciprocal -> widened tolerance vs f32 reference.
    assert jnp.allclose(out, ref, atol=3e-2, rtol=3e-2), "mismatch vs reference"

    # --- 128-aligned config exercising the real layout path (D=128), the
    #     K/V-hoist carry over multiple query tiles, and both inner loops ---
    B2, S2, E2, H2 = 2, 256, 256, 2
    x2 = jax.random.normal(kx2, (B2, S2, E2), jnp.float32)
    params2 = init_params(kp2, E2, H2)
    out2 = jax.block_until_ready(
        self_attention_block(x2, params2, H2, q_tile=128, kv_tile=128,
                             ff_chunk=256))
    ref2 = reference(x2, params2, H2)
    assert out2.shape == (B2, S2, E2)
    assert jnp.allclose(out2, ref2, atol=5e-2, rtol=1e-1), "mismatch (aligned cfg)"

    print("KERNEL_OK")
</pallas_src>

<mosaic_0001>
module attributes {stable_mosaic.version = 11 : i64} {
  func.func @self_attn_block_kernel(%arg0: i32, %arg1: i32, %arg2: memref<1x8x32xf32, #tpu.memory_space<vmem>>, %arg3: memref<1x8x32xbf16, #tpu.memory_space<vmem>>, %arg4: memref<32x32xbf16, #tpu.memory_space<vmem>>, %arg5: memref<1x32xf32, #tpu.memory_space<vmem>>, %arg6: memref<32x64xbf16, #tpu.memory_space<vmem>>, %arg7: memref<1x64xf32, #tpu.memory_space<vmem>>, %arg8: memref<1x32xf32, #tpu.memory_space<vmem>>, %arg9: memref<1x32xf32, #tpu.memory_space<vmem>>, %arg10: memref<128x32xbf16, #tpu.memory_space<vmem>>, %arg11: memref<1x128xf32, #tpu.memory_space<vmem>>, %arg12: memref<128x32xbf16, #tpu.memory_space<vmem>>, %arg13: memref<1x32xf32, #tpu.memory_space<vmem>>, %arg14: memref<1x32xf32, #tpu.memory_space<vmem>>, %arg15: memref<1x32xf32, #tpu.memory_space<vmem>>, %arg16: memref<1x8x32xf32, #tpu.memory_space<vmem>>, %arg17: memref<4x8x8xbf16, #tpu.memory_space<vmem>>, %arg18: memref<4x8x8xbf16, #tpu.memory_space<vmem>>, %arg19: memref<4x8x8xbf16, #tpu.memory_space<vmem>>, %arg20: memref<8x32xf32, #tpu.memory_space<vmem>>) attributes {dimension_semantics = [#tpu.dimension_semantics<parallel>, #tpu.dimension_semantics<arbitrary>], iteration_bounds = array<i64: 2, 1>, scalar_prefetch = 0 : i64, scratch_operands = 4 : i64, tpu.core_type = #tpu.core_type<tc>, window_params = [{transform_indices = @transform_0, window_bounds = array<i64: 1, 8, 32>}, {transform_indices = @transform_1, window_bounds = array<i64: 1, 8, 32>}, {pipeline_mode = #tpu.pipeline_mode<synchronous>, transform_indices = @transform_2, window_bounds = array<i64: 32, 32>}, {pipeline_mode = #tpu.pipeline_mode<synchronous>, transform_indices = @transform_3, window_bounds = array<i64: 1, 32>}, {pipeline_mode = #tpu.pipeline_mode<synchronous>, transform_indices = @transform_4, window_bounds = array<i64: 32, 64>}, {pipeline_mode = #tpu.pipeline_mode<synchronous>, transform_indices = @transform_5, window_bounds = array<i64: 1, 64>}, {pipeline_mode = #tpu.pipeline_mode<synchronous>, transform_indices = @transform_6, window_bounds = array<i64: 1, 32>}, {pipeline_mode = #tpu.pipeline_mode<synchronous>, transform_indices = @transform_7, window_bounds = array<i64: 1, 32>}, {pipeline_mode = #tpu.pipeline_mode<synchronous>, transform_indices = @transform_8, window_bounds = array<i64: 128, 32>}, {pipeline_mode = #tpu.pipeline_mode<synchronous>, transform_indices = @transform_9, window_bounds = array<i64: 1, 128>}, {pipeline_mode = #tpu.pipeline_mode<synchronous>, transform_indices = @transform_10, window_bounds = array<i64: 128, 32>}, {pipeline_mode = #tpu.pipeline_mode<synchronous>, transform_indices = @transform_11, window_bounds = array<i64: 1, 32>}, {pipeline_mode = #tpu.pipeline_mode<synchronous>, transform_indices = @transform_12, window_bounds = array<i64: 1, 32>}, {pipeline_mode = #tpu.pipeline_mode<synchronous>, transform_indices = @transform_13, window_bounds = array<i64: 1, 32>}, {transform_indices = @transform_14, window_bounds = array<i64: 1, 8, 32>}]} {
    %c0_i32 = arith.constant 0 : i32
    %0 = arith.cmpi eq, %arg1, %c0_i32 : i32
    %1 = arith.extui %0 : i1 to i32
    %c0_i32_0 = arith.constant 0 : i32
    %2 = arith.cmpi ne, %1, %c0_i32_0 : i32
    scf.if %2 {
      %c0_71 = arith.constant 0 : index
      %c0_72 = arith.constant 0 : index
      %c0_73 = arith.constant 0 : index
      %151 = vector.load %arg3[%c0_71, %c0_72, %c0_73] : memref<1x8x32xbf16, #tpu.memory_space<vmem>>, vector<1x8x32xbf16>
      %152 = vector.shape_cast %151 : vector<1x8x32xbf16> to vector<8x32xbf16>
      %c0_74 = arith.constant 0 : index
      %c0_75 = arith.constant 0 : index
      %153 = vector.load %arg6[%c0_74, %c0_75] : memref<32x64xbf16, #tpu.memory_space<vmem>>, vector<32x64xbf16>
      %cst_76 = arith.constant dense<0.000000e+00> : vector<8x64xf32>
      %154 = tpu.matmul %152, %153, %cst_76 {dimension_numbers = #tpu.dot_dimension_numbers<[1], [0], [0], [1], [0, 0, 1, 1], [], []>} : vector<8x32xbf16>, vector<32x64xbf16>, vector<8x64xf32> -> vector<8x64xf32>
      %c0_77 = arith.constant 0 : index
      %c0_78 = arith.constant 0 : index
      %155 = vector.load %arg7[%c0_77, %c0_78] : memref<1x64xf32, #tpu.memory_space<vmem>>, vector<1x64xf32>
      %156 = vector.broadcast %155 : vector<1x64xf32> to vector<8x64xf32>
      %157 = arith.addf %154, %156 : vector<8x64xf32>
      %158 = vector.extract_strided_slice %157 {offsets = [0, 0], sizes = [8, 8], strides = [1, 1]} : vector<8x64xf32> to vector<8x8xf32>
      %159 = arith.truncf %158 : vector<8x8xf32> to vector<8x8xbf16>
      %c0_79 = arith.constant 0 : index
      %c0_80 = arith.constant 0 : index
      %c0_81 = arith.constant 0 : index
      %160 = vector.load %arg18[%c0_79, %c0_80, %c0_81] : memref<4x8x8xbf16, #tpu.memory_space<vmem>>, vector<1x8x8xbf16>
      %161 = vector.shape_cast %160 : vector<1x8x8xbf16> to vector<8x8xbf16>
      %162 = vector.shape_cast %159 : vector<8x8xbf16> to vector<1x8x8xbf16>
      tpu.vector_store %arg18[%c0_79, %c0_80, %c0_81], %162 {strides = array<i32>} : memref<4x8x8xbf16, #tpu.memory_space<vmem>>, vector<1x8x8xbf16>,
      %163 = vector.extract_strided_slice %157 {offsets = [0, 32], sizes = [8, 8], strides = [1, 1]} : vector<8x64xf32> to vector<8x8xf32>
      %164 = arith.truncf %163 : vector<8x8xf32> to vector<8x8xbf16>
      %c0_82 = arith.constant 0 : index
      %c0_83 = arith.constant 0 : index
      %c0_84 = arith.constant 0 : index
      %165 = vector.load %arg19[%c0_82, %c0_83, %c0_84] : memref<4x8x8xbf16, #tpu.memory_space<vmem>>, vector<1x8x8xbf16>
      %166 = vector.shape_cast %165 : vector<1x8x8xbf16> to vector<8x8xbf16>
      %167 = vector.shape_cast %164 : vector<8x8xbf16> to vector<1x8x8xbf16>
      tpu.vector_store %arg19[%c0_82, %c0_83, %c0_84], %167 {strides = array<i32>} : memref<4x8x8xbf16, #tpu.memory_space<vmem>>, vector<1x8x8xbf16>,
      %168 = vector.extract_strided_slice %157 {offsets = [0, 8], sizes = [8, 8], strides = [1, 1]} : vector<8x64xf32> to vector<8x8xf32>
      %169 = arith.truncf %168 : vector<8x8xf32> to vector<8x8xbf16>
      %c1_85 = arith.constant 1 : index
      %c0_86 = arith.constant 0 : index
      %c0_87 = arith.constant 0 : index
      %170 = vector.load %arg18[%c1_85, %c0_86, %c0_87] : memref<4x8x8xbf16, #tpu.memory_space<vmem>>, vector<1x8x8xbf16>
      %171 = vector.shape_cast %170 : vector<1x8x8xbf16> to vector<8x8xbf16>
      %172 = vector.shape_cast %169 : vector<8x8xbf16> to vector<1x8x8xbf16>
      tpu.vector_store %arg18[%c1_85, %c0_86, %c0_87], %172 {strides = array<i32>} : memref<4x8x8xbf16, #tpu.memory_space<vmem>>, vector<1x8x8xbf16>,
      %173 = vector.extract_strided_slice %157 {offsets = [0, 40], sizes = [8, 8], strides = [1, 1]} : vector<8x64xf32> to vector<8x8xf32>
      %174 = arith.truncf %173 : vector<8x8xf32> to vector<8x8xbf16>
      %c1_88 = arith.constant 1 : index
      %c0_89 = arith.constant 0 : index
      %c0_90 = arith.constant 0 : index
      %175 = vector.load %arg19[%c1_88, %c0_89, %c0_90] : memref<4x8x8xbf16, #tpu.memory_space<vmem>>, vector<1x8x8xbf16>
      %176 = vector.shape_cast %175 : vector<1x8x8xbf16> to vector<8x8xbf16>
      %177 = vector.shape_cast %174 : vector<8x8xbf16> to vector<1x8x8xbf16>
      tpu.vector_store %arg19[%c1_88, %c0_89, %c0_90], %177 {strides = array<i32>} : memref<4x8x8xbf16, #tpu.memory_space<vmem>>, vector<1x8x8xbf16>,
      %178 = vector.extract_strided_slice %157 {offsets = [0, 16], sizes = [8, 8], strides = [1, 1]} : vector<8x64xf32> to vector<8x8xf32>
      %179 = arith.truncf %178 : vector<8x8xf32> to vector<8x8xbf16>
      %c2_91 = arith.constant 2 : index
      %c0_92 = arith.constant 0 : index
      %c0_93 = arith.constant 0 : index
      %180 = vector.load %arg18[%c2_91, %c0_92, %c0_93] : memref<4x8x8xbf16, #tpu.memory_space<vmem>>, vector<1x8x8xbf16>
      %181 = vector.shape_cast %180 : vector<1x8x8xbf16> to vector<8x8xbf16>
      %182 = vector.shape_cast %179 : vector<8x8xbf16> to vector<1x8x8xbf16>
      tpu.vector_store %arg18[%c2_91, %c0_92, %c0_93], %182 {strides = array<i32>} : memref<4x8x8xbf16, #tpu.memory_space<vmem>>, vector<1x8x8xbf16>,
      %183 = vector.extract_strided_slice %157 {offsets = [0, 48], sizes = [8, 8], strides = [1, 1]} : vector<8x64xf32> to vector<8x8xf32>
      %184 = arith.truncf %183 : vector<8x8xf32> to vector<8x8xbf16>
      %c2_94 = arith.constant 2 : index
      %c0_95 = arith.constant 0 : index
      %c0_96 = arith.constant 0 : index
      %185 = vector.load %arg19[%c2_94, %c0_95, %c0_96] : memref<4x8x8xbf16, #tpu.memory_space<vmem>>, vector<1x8x8xbf16>
      %186 = vector.shape_cast %185 : vector<1x8x8xbf16> to vector<8x8xbf16>
      %187 = vector.shape_cast %184 : vector<8x8xbf16> to vector<1x8x8xbf16>
      tpu.vector_store %arg19[%c2_94, %c0_95, %c0_96], %187 {strides = array<i32>} : memref<4x8x8xbf16, #tpu.memory_space<vmem>>, vector<1x8x8xbf16>,
      %188 = vector.extract_strided_slice %157 {offsets = [0, 24], sizes = [8, 8], strides = [1, 1]} : vector<8x64xf32> to vector<8x8xf32>
      %189 = arith.truncf %188 : vector<8x8xf32> to vector<8x8xbf16>
      %c3_97 = arith.constant 3 : index
      %c0_98 = arith.constant 0 : index
      %c0_99 = arith.constant 0 : index
      %190 = vector.load %arg18[%c3_97, %c0_98, %c0_99] : memref<4x8x8xbf16, #tpu.memory_space<vmem>>, vector<1x8x8xbf16>
      %191 = vector.shape_cast %190 : vector<1x8x8xbf16> to vector<8x8xbf16>
      %192 = vector.shape_cast %189 : vector<8x8xbf16> to vector<1x8x8xbf16>
      tpu.vector_store %arg18[%c3_97, %c0_98, %c0_99], %192 {strides = array<i32>} : memref<4x8x8xbf16, #tpu.memory_space<vmem>>, vector<1x8x8xbf16>,
      %193 = vector.extract_strided_slice %157 {offsets = [0, 56], sizes = [8, 8], strides = [1, 1]} : vector<8x64xf32> to vector<8x8xf32>
      %194 = arith.truncf %193 : vector<8x8xf32> to vector<8x8xbf16>
      %c3_100 = arith.constant 3 : index
      %c0_101 = arith.constant 0 : index
      %c0_102 = arith.constant 0 : index
      %195 = vector.load %arg19[%c3_100, %c0_101, %c0_102] : memref<4x8x8xbf16, #tpu.memory_space<vmem>>, vector<1x8x8xbf16>
      %196 = vector.shape_cast %195 : vector<1x8x8xbf16> to vector<8x8xbf16>
      %197 = vector.shape_cast %194 : vector<8x8xbf16> to vector<1x8x8xbf16>
      tpu.vector_store %arg19[%c3_100, %c0_101, %c0_102], %197 {strides = array<i32>} : memref<4x8x8xbf16, #tpu.memory_space<vmem>>, vector<1x8x8xbf16>,
    } else {
    }
    %c0 = arith.constant 0 : index
    %c0_1 = arith.constant 0 : index
    %c0_2 = arith.constant 0 : index
    %3 = vector.load %arg2[%c0, %c0_1, %c0_2] : memref<1x8x32xf32, #tpu.memory_space<vmem>>, vector<1x8x32xf32>
    %4 = vector.shape_cast %3 : vector<1x8x32xf32> to vector<8x32xf32>
    %5 = arith.truncf %4 : vector<8x32xf32> to vector<8x32xbf16>
    %c0_3 = arith.constant 0 : index
    %c0_4 = arith.constant 0 : index
    %6 = vector.load %arg4[%c0_3, %c0_4] : memref<32x32xbf16, #tpu.memory_space<vmem>>, vector<32x32xbf16>
    %cst = arith.constant dense<0.000000e+00> : vector<8x32xf32>
    %7 = tpu.matmul %5, %6, %cst {dimension_numbers = #tpu.dot_dimension_numbers<[1], [0], [0], [1], [0, 0, 1, 1], [], []>} : vector<8x32xbf16>, vector<32x32xbf16>, vector<8x32xf32> -> vector<8x32xf32>
    %c0_5 = arith.constant 0 : index
    %c0_6 = arith.constant 0 : index
    %8 = vector.load %arg5[%c0_5, %c0_6] : memref<1x32xf32, #tpu.memory_space<vmem>>, vector<1x32xf32>
    %9 = vector.broadcast %8 : vector<1x32xf32> to vector<8x32xf32>
    %10 = arith.addf %7, %9 : vector<8x32xf32>
    %cst_7 = arith.constant 0.353553385 : f32
    %11 = vector.broadcast %cst_7 : f32 to vector<8x32xf32>
    %12 = arith.mulf %10, %11 : vector<8x32xf32>
    %13 = vector.extract_strided_slice %12 {offsets = [0, 0], sizes = [8, 8], strides = [1, 1]} : vector<8x32xf32> to vector<8x8xf32>
    %14 = arith.truncf %13 : vector<8x8xf32> to vector<8x8xbf16>
    %c0_8 = arith.constant 0 : index
    %c0_9 = arith.constant 0 : index
    %c0_10 = arith.constant 0 : index
    %15 = vector.load %arg17[%c0_8, %c0_9, %c0_10] : memref<4x8x8xbf16, #tpu.memory_space<vmem>>, vector<1x8x8xbf16>
    %16 = vector.shape_cast %15 : vector<1x8x8xbf16> to vector<8x8xbf16>
    %17 = vector.shape_cast %14 : vector<8x8xbf16> to vector<1x8x8xbf16>
    tpu.vector_store %arg17[%c0_8, %c0_9, %c0_10], %17 {strides = array<i32>} : memref<4x8x8xbf16, #tpu.memory_space<vmem>>, vector<1x8x8xbf16>,
    %18 = vector.extract_strided_slice %12 {offsets = [0, 8], sizes = [8, 8], strides = [1, 1]} : vector<8x32xf32> to vector<8x8xf32>
    %19 = arith.truncf %18 : vector<8x8xf32> to vector<8x8xbf16>
    %c1 = arith.constant 1 : index
    %c0_11 = arith.constant 0 : index
    %c0_12 = arith.constant 0 : index
    %20 = vector.load %arg17[%c1, %c0_11, %c0_12] : memref<4x8x8xbf16, #tpu.memory_space<vmem>>, vector<1x8x8xbf16>
    %21 = vector.shape_cast %20 : vector<1x8x8xbf16> to vector<8x8xbf16>
    %22 = vector.shape_cast %19 : vector<8x8xbf16> to vector<1x8x8xbf16>
    tpu.vector_store %arg17[%c1, %c0_11, %c0_12], %22 {strides = array<i32>} : memref<4x8x8xbf16, #tpu.memory_space<vmem>>, vector<1x8x8xbf16>,
    %23 = vector.extract_strided_slice %12 {offsets = [0, 16], sizes = [8, 8], strides = [1, 1]} : vector<8x32xf32> to vector<8x8xf32>
    %24 = arith.truncf %23 : vector<8x8xf32> to vector<8x8xbf16>
    %c2 = arith.constant 2 : index
    %c0_13 = arith.constant 0 : index
    %c0_14 = arith.constant 0 : index
    %25 = vector.load %arg17[%c2, %c0_13, %c0_14] : memref<4x8x8xbf16, #tpu.memory_space<vmem>>, vector<1x8x8xbf16>
    %26 = vector.shape_cast %25 : vector<1x8x8xbf16> to vector<8x8xbf16>
    %27 = vector.shape_cast %24 : vector<8x8xbf16> to vector<1x8x8xbf16>
    tpu.vector_store %arg17[%c2, %c0_13, %c0_14], %27 {strides = array<i32>} : memref<4x8x8xbf16, #tpu.memory_space<vmem>>, vector<1x8x8xbf16>,
    %28 = vector.extract_strided_slice %12 {offsets = [0, 24], sizes = [8, 8], strides = [1, 1]} : vector<8x32xf32> to vector<8x8xf32>
    %29 = arith.truncf %28 : vector<8x8xf32> to vector<8x8xbf16>
    %c3 = arith.constant 3 : index
    %c0_15 = arith.constant 0 : index
    %c0_16 = arith.constant 0 : index
    %30 = vector.load %arg17[%c3, %c0_15, %c0_16] : memref<4x8x8xbf16, #tpu.memory_space<vmem>>, vector<1x8x8xbf16>
    %31 = vector.shape_cast %30 : vector<1x8x8xbf16> to vector<8x8xbf16>
    %32 = vector.shape_cast %29 : vector<8x8xbf16> to vector<1x8x8xbf16>
    tpu.vector_store %arg17[%c3, %c0_15, %c0_16], %32 {strides = array<i32>} : memref<4x8x8xbf16, #tpu.memory_space<vmem>>, vector<1x8x8xbf16>,
    %c0_17 = arith.constant 0 : index
    %c0_18 = arith.constant 0 : index
    %c0_19 = arith.constant 0 : index
    %33 = vector.load %arg17[%c0_17, %c0_18, %c0_19] : memref<4x8x8xbf16, #tpu.memory_space<vmem>>, vector<4x8x8xbf16>
    %cst_20 = arith.constant 0xFF800000 : f32
    %34 = vector.broadcast %cst_20 : f32 to vector<4x8x1xf32>
    %cst_21 = arith.constant 0.000000e+00 : f32
    %35 = vector.broadcast %cst_21 : f32 to vector<4x8x1xf32>
    %cst_22 = arith.constant 0.000000e+00 : f32
    %36 = vector.broadcast %cst_22 : f32 to vector<4x8x8xf32>
    %c0_i32_23 = arith.constant 0 : i32
    %c8_i32 = arith.constant 8 : i32
    %37 = arith.muli %c0_i32_23, %c8_i32 : i32
    %38 = tpu.assume_multiple %37, 8 : i32
    %c0_24 = arith.constant 0 : index
    %39 = arith.index_cast %38 : i32 to index
    %c0_25 = arith.constant 0 : index
    %40 = vector.load %arg18[%c0_24, %39, %c0_25] : memref<4x8x8xbf16, #tpu.memory_space<vmem>>, vector<4x8x8xbf16>
    %c0_26 = arith.constant 0 : index
    %41 = arith.index_cast %38 : i32 to index
    %c0_27 = arith.constant 0 : index
    %42 = vector.load %arg19[%c0_26, %41, %c0_27] : memref<4x8x8xbf16, #tpu.memory_space<vmem>>, vector<4x8x8xbf16>
    "tpu.trace_start"() <{level = 10 : i32, message = "hqd,hkd->hqk"}> : () -> ()
    %cst_28 = arith.constant dense<0.000000e+00> : vector<4x8x8xf32>
    %43 = tpu.matmul %33, %40, %cst_28 {dimension_numbers = #tpu.dot_dimension_numbers<[2], [2], [1], [1], [0, 0, 0, 1, 1, 1], [0], [0]>} : vector<4x8x8xbf16>, vector<4x8x8xbf16>, vector<4x8x8xf32> -> vector<4x8x8xf32>
    "tpu.trace_stop"() : () -> ()
    %cst_29 = arith.constant dense<0xFF800000> : vector<4x8xf32>
    %44 = vector.multi_reduction <maximumf>, %43, %cst_29 [2] : vector<4x8x8xf32> to vector<4x8xf32>
    %45 = vector.shape_cast %44 : vector<4x8xf32> to vector<4x8x1xf32>
    %46 = arith.maximumf %34, %45 : vector<4x8x1xf32>
    %47 = arith.subf %34, %46 : vector<4x8x1xf32>
    %48 = math.exp %47 : vector<4x8x1xf32>
    %49 = vector.broadcast %46 : vector<4x8x1xf32> to vector<4x8x8xf32>
    %50 = arith.subf %43, %49 : vector<4x8x8xf32>
    %51 = math.exp %50 : vector<4x8x8xf32>
    %52 = arith.mulf %48, %35 : vector<4x8x1xf32>
    %cst_30 = arith.constant dense<0.000000e+00> : vector<4x8xf32>
    %53 = vector.multi_reduction <add>, %51, %cst_30 [2] : vector<4x8x8xf32> to vector<4x8xf32>
    %54 = vector.shape_cast %53 : vector<4x8xf32> to vector<4x8x1xf32>
    %55 = arith.addf %52, %54 : vector<4x8x1xf32>
    %56 = vector.broadcast %48 : vector<4x8x1xf32> to vector<4x8x8xf32>
    %57 = arith.mulf %56, %36 : vector<4x8x8xf32>
    %58 = arith.truncf %51 : vector<4x8x8xf32> to vector<4x8x8xbf16>
    "tpu.trace_start"() <{level = 10 : i32, message = "hqk,hkd->hqd"}> : () -> ()
    %cst_31 = arith.constant dense<0.000000e+00> : vector<4x8x8xf32>
    %59 = tpu.matmul %58, %42, %cst_31 {dimension_numbers = #tpu.dot_dimension_numbers<[2], [1], [1], [2], [0, 0, 0, 1, 1, 2], [0], [0]>} : vector<4x8x8xbf16>, vector<4x8x8xbf16>, vector<4x8x8xf32> -> vector<4x8x8xf32>
    "tpu.trace_stop"() : () -> ()
    %60 = arith.addf %57, %59 : vector<4x8x8xf32>
    %c1_i32 = arith.constant 1 : i32
    %61 = tpu.reciprocal %55 {approx = true} : vector<4x8x1xf32> -> vector<4x8x1xf32>
    %62 = vector.broadcast %61 : vector<4x8x1xf32> to vector<4x8x8xf32>
    %63 = arith.mulf %60, %62 : vector<4x8x8xf32>
    %64 = vector.extract_strided_slice %63 {offsets = [0, 0, 0], sizes = [1, 8, 8], strides = [1, 1, 1]} : vector<4x8x8xf32> to vector<1x8x8xf32>
    %65 = vector.shape_cast %64 : vector<1x8x8xf32> to vector<8x8xf32>
    %c0_32 = arith.constant 0 : index
    %c0_33 = arith.constant 0 : index
    %66 = vector.load %arg20[%c0_32, %c0_33] : memref<8x32xf32, #tpu.memory_space<vmem>>, vector<8x8xf32>
    tpu.vector_store %arg20[%c0_32, %c0_33], %65 {strides = array<i32>} : memref<8x32xf32, #tpu.memory_space<vmem>>, vector<8x8xf32>,
    %67 = vector.extract_strided_slice %63 {offsets = [1, 0, 0], sizes = [1, 8, 8], strides = [1, 1, 1]} : vector<4x8x8xf32> to vector<1x8x8xf32>
    %68 = vector.shape_cast %67 : vector<1x8x8xf32> to vector<8x8xf32>
    %c0_34 = arith.constant 0 : index
    %c8 = arith.constant 8 : index
    %69 = vector.load %arg20[%c0_34, %c8] : memref<8x32xf32, #tpu.memory_space<vmem>>, vector<8x8xf32>
    tpu.vector_store %arg20[%c0_34, %c8], %68 {strides = array<i32>} : memref<8x32xf32, #tpu.memory_space<vmem>>, vector<8x8xf32>,
    %70 = vector.extract_strided_slice %63 {offsets = [2, 0, 0], sizes = [1, 8, 8], strides = [1, 1, 1]} : vector<4x8x8xf32> to vector<1x8x8xf32>
    %71 = vector.shape_cast %70 : vector<1x8x8xf32> to vector<8x8xf32>
    %c0_35 = arith.constant 0 : index
    %c16 = arith.constant 16 : index
    %72 = vector.load %arg20[%c0_35, %c16] : memref<8x32xf32, #tpu.memory_space<vmem>>, vector<8x8xf32>
    tpu.vector_store %arg20[%c0_35, %c16], %71 {strides = array<i32>} : memref<8x32xf32, #tpu.memory_space<vmem>>, vector<8x8xf32>,
    %73 = vector.extract_strided_slice %63 {offsets = [3, 0, 0], sizes = [1, 8, 8], strides = [1, 1, 1]} : vector<4x8x8xf32> to vector<1x8x8xf32>
    %74 = vector.shape_cast %73 : vector<1x8x8xf32> to vector<8x8xf32>
    %c0_36 = arith.constant 0 : index
    %c24 = arith.constant 24 : index
    %75 = vector.load %arg20[%c0_36, %c24] : memref<8x32xf32, #tpu.memory_space<vmem>>, vector<8x8xf32>
    tpu.vector_store %arg20[%c0_36, %c24], %74 {strides = array<i32>} : memref<8x32xf32, #tpu.memory_space<vmem>>, vector<8x8xf32>,
    %c0_37 = arith.constant 0 : index
    %c0_38 = arith.constant 0 : index
    %76 = vector.load %arg20[%c0_37, %c0_38] : memref<8x32xf32, #tpu.memory_space<vmem>>, vector<8x32xf32>
    %77 = arith.addf %4, %76 : vector<8x32xf32>
    %c0_39 = arith.constant 0 : index
    %c0_40 = arith.constant 0 : index
    %78 = vector.load %arg8[%c0_39, %c0_40] : memref<1x32xf32, #tpu.memory_space<vmem>>, vector<1x32xf32>
    %c0_41 = arith.constant 0 : index
    %c0_42 = arith.constant 0 : index
    %79 = vector.load %arg9[%c0_41, %c0_42] : memref<1x32xf32, #tpu.memory_space<vmem>>, vector<1x32xf32>
    %cst_43 = arith.constant dense<0.000000e+00> : vector<8xf32>
    %80 = vector.multi_reduction <add>, %77, %cst_43 [1] : vector<8x32xf32> to vector<8xf32>
    %81 = vector.shape_cast %80 : vector<8xf32> to vector<8x1xf32>
    %cst_44 = arith.constant 3.200000e+01 : f32
    %82 = vector.broadcast %cst_44 : f32 to vector<8x1xf32>
    %83 = arith.divf %81, %82 : vector<8x1xf32>
    %84 = vector.broadcast %83 : vector<8x1xf32> to vector<8x32xf32>
    %85 = arith.subf %77, %84 : vector<8x32xf32>
    %86 = arith.mulf %85, %85 : vector<8x32xf32>
    %cst_45 = arith.constant dense<0.000000e+00> : vector<8xf32>
    %87 = vector.multi_reduction <add>, %86, %cst_45 [1] : vector<8x32xf32> to vector<8xf32>
    %88 = vector.shape_cast %87 : vector<8xf32> to vector<8x1xf32>
    %cst_46 = arith.constant 3.200000e+01 : f32
    %89 = vector.broadcast %cst_46 : f32 to vector<8x1xf32>
    %90 = arith.divf %88, %89 : vector<8x1xf32>
    %cst_47 = arith.constant 9.99999974E-6 : f32
    %91 = vector.broadcast %cst_47 : f32 to vector<8x1xf32>
    %92 = arith.addf %90, %91 : vector<8x1xf32>
    %93 = math.rsqrt %92 : vector<8x1xf32>
    %94 = vector.broadcast %83 : vector<8x1xf32> to vector<8x32xf32>
    %95 = arith.subf %77, %94 : vector<8x32xf32>
    %96 = vector.broadcast %93 : vector<8x1xf32> to vector<8x32xf32>
    %97 = arith.mulf %95, %96 : vector<8x32xf32>
    %98 = vector.broadcast %78 : vector<1x32xf32> to vector<8x32xf32>
    %99 = arith.mulf %97, %98 : vector<8x32xf32>
    %100 = vector.broadcast %79 : vector<1x32xf32> to vector<8x32xf32>
    %101 = arith.addf %99, %100 : vector<8x32xf32>
    %102 = arith.truncf %101 : vector<8x32xf32> to vector<8x32xbf16>
    %cst_48 = arith.constant 0.000000e+00 : f32
    %103 = vector.broadcast %cst_48 : f32 to vector<8x32xf32>
    %c0_i32_49 = arith.constant 0 : i32
    %c128_i32 = arith.constant 128 : i32
    %104 = arith.muli %c0_i32_49, %c128_i32 : i32
    %105 = tpu.assume_multiple %104, 128 : i32
    %106 = arith.index_cast %105 : i32 to index
    %c0_50 = arith.constant 0 : index
    %107 = vector.load %arg10[%106, %c0_50] : memref<128x32xbf16, #tpu.memory_space<vmem>>, vector<128x32xbf16>
    %108 = arith.index_cast %c0_i32_49 : i32 to index
    %c0_51 = arith.constant 0 : index
    %109 = vector.load %arg11[%108, %c0_51] : memref<1x128xf32, #tpu.memory_space<vmem>>, vector<1x128xf32>
    %cst_52 = arith.constant dense<0.000000e+00> : vector<8x128xf32>
    %110 = tpu.matmul %102, %107, %cst_52 {dimension_numbers = #tpu.dot_dimension_numbers<[1], [1], [0], [0], [0, 0, 1, 0], [], []>} : vector<8x32xbf16>, vector<128x32xbf16>, vector<8x128xf32> -> vector<8x128xf32>
    %111 = vector.broadcast %109 : vector<1x128xf32> to vector<8x128xf32>
    %112 = arith.addf %110, %111 : vector<8x128xf32>
    %cst_53 = arith.constant 0.000000e+00 : f32
    %113 = vector.broadcast %cst_53 : f32 to vector<8x128xf32>
    %114 = arith.maximumf %112, %113 : vector<8x128xf32>
    %115 = arith.index_cast %105 : i32 to index
    %c0_54 = arith.constant 0 : index
    %116 = vector.load %arg12[%115, %c0_54] : memref<128x32xbf16, #tpu.memory_space<vmem>>, vector<128x32xbf16>
    %117 = arith.truncf %114 : vector<8x128xf32> to vector<8x128xbf16>
    %cst_55 = arith.constant dense<0.000000e+00> : vector<8x32xf32>
    %118 = tpu.matmul %117, %116, %cst_55 {dimension_numbers = #tpu.dot_dimension_numbers<[1], [0], [0], [1], [0, 0, 1, 1], [], []>} : vector<8x128xbf16>, vector<128x32xbf16>, vector<8x32xf32> -> vector<8x32xf32>
    %119 = arith.addf %103, %118 : vector<8x32xf32>
    %c1_i32_56 = arith.constant 1 : i32
    %c0_57 = arith.constant 0 : index
    %c0_58 = arith.constant 0 : index
    %120 = vector.load %arg13[%c0_57, %c0_58] : memref<1x32xf32, #tpu.memory_space<vmem>>, vector<1x32xf32>
    %121 = vector.broadcast %120 : vector<1x32xf32> to vector<8x32xf32>
    %122 = arith.addf %119, %121 : vector<8x32xf32>
    %123 = arith.addf %101, %122 : vector<8x32xf32>
    %c0_59 = arith.constant 0 : index
    %c0_60 = arith.constant 0 : index
    %124 = vector.load %arg14[%c0_59, %c0_60] : memref<1x32xf32, #tpu.memory_space<vmem>>, vector<1x32xf32>
    %c0_61 = arith.constant 0 : index
    %c0_62 = arith.constant 0 : index
    %125 = vector.load %arg15[%c0_61, %c0_62] : memref<1x32xf32, #tpu.memory_space<vmem>>, vector<1x32xf32>
    %cst_63 = arith.constant dense<0.000000e+00> : vector<8xf32>
    %126 = vector.multi_reduction <add>, %123, %cst_63 [1] : vector<8x32xf32> to vector<8xf32>
    %127 = vector.shape_cast %126 : vector<8xf32> to vector<8x1xf32>
    %cst_64 = arith.constant 3.200000e+01 : f32
    %128 = vector.broadcast %cst_64 : f32 to vector<8x1xf32>
    %129 = arith.divf %127, %128 : vector<8x1xf32>
    %130 = vector.broadcast %129 : vector<8x1xf32> to vector<8x32xf32>
    %131 = arith.subf %123, %130 : vector<8x32xf32>
    %132 = arith.mulf %131, %131 : vector<8x32xf32>
    %cst_65 = arith.constant dense<0.000000e+00> : vector<8xf32>
    %133 = vector.multi_reduction <add>, %132, %cst_65 [1] : vector<8x32xf32> to vector<8xf32>
    %134 = vector.shape_cast %133 : vector<8xf32> to vector<8x1xf32>
    %cst_66 = arith.constant 3.200000e+01 : f32
    %135 = vector.broadcast %cst_66 : f32 to vector<8x1xf32>
    %136 = arith.divf %134, %135 : vector<8x1xf32>
    %cst_67 = arith.constant 9.99999974E-6 : f32
    %137 = vector.broadcast %cst_67 : f32 to vector<8x1xf32>
    %138 = arith.addf %136, %137 : vector<8x1xf32>
    %139 = math.rsqrt %138 : vector<8x1xf32>
    %140 = vector.broadcast %129 : vector<8x1xf32> to vector<8x32xf32>
    %141 = arith.subf %123, %140 : vector<8x32xf32>
    %142 = vector.broadcast %139 : vector<8x1xf32> to vector<8x32xf32>
    %143 = arith.mulf %141, %142 : vector<8x32xf32>
    %144 = vector.broadcast %124 : vector<1x32xf32> to vector<8x32xf32>
    %145 = arith.mulf %143, %144 : vector<8x32xf32>
    %146 = vector.broadcast %125 : vector<1x32xf32> to vector<8x32xf32>
    %147 = arith.addf %145, %146 : vector<8x32xf32>
    %c0_68 = arith.constant 0 : index
    %c0_69 = arith.constant 0 : index
    %c0_70 = arith.constant 0 : index
    %148 = vector.load %arg16[%c0_68, %c0_69, %c0_70] : memref<1x8x32xf32, #tpu.memory_space<vmem>>, vector<1x8x32xf32>
    %149 = vector.shape_cast %148 : vector<1x8x32xf32> to vector<8x32xf32>
    %150 = vector.shape_cast %147 : vector<8x32xf32> to vector<1x8x32xf32>
    tpu.vector_store %arg16[%c0_68, %c0_69, %c0_70], %150 {strides = array<i32>} : memref<1x8x32xf32, #tpu.memory_space<vmem>>, vector<1x8x32xf32>,
    return
  }
  func.func @transform_0(%arg0: i32, %arg1: i32) -> (i32, i32, i32) {
    %c0_i32 = arith.constant 0 : i32
    %c0_i32_0 = arith.constant 0 : i32
    return %arg0, %arg1, %c0_i32 : i32, i32, i32
  }
  func.func @transform_1(%arg0: i32, %arg1: i32) -> (i32, i32, i32) {
    %c0_i32 = arith.constant 0 : i32
    %c0_i32_0 = arith.constant 0 : i32
    %c0_i32_1 = arith.constant 0 : i32
    return %arg0, %c0_i32, %c0_i32_0 : i32, i32, i32
  }
  func.func @transform_2(%arg0: i32, %arg1: i32) -> (i32, i32) {
    %c0_i32 = arith.constant 0 : i32
    %c0_i32_0 = arith.constant 0 : i32
    %c0_i32_1 = arith.constant 0 : i32
    return %c0_i32, %c0_i32_0 : i32, i32
  }
  func.func @transform_3(%arg0: i32, %arg1: i32) -> (i32, i32) {
    %c0_i32 = arith.constant 0 : i32
    %c0_i32_0 = arith.constant 0 : i32
    %c0_i32_1 = arith.constant 0 : i32
    return %c0_i32, %c0_i32_0 : i32, i32
  }
  func.func @transform_4(%arg0: i32, %arg1: i32) -> (i32, i32) {
    %c0_i32 = arith.constant 0 : i32
    %c0_i32_0 = arith.constant 0 : i32
    %c0_i32_1 = arith.constant 0 : i32
    return %c0_i32, %c0_i32_0 : i32, i32
  }
  func.func @transform_5(%arg0: i32, %arg1: i32) -> (i32, i32) {
    %c0_i32 = arith.constant 0 : i32
    %c0_i32_0 = arith.constant 0 : i32
    %c0_i32_1 = arith.constant 0 : i32
    return %c0_i32, %c0_i32_0 : i32, i32
  }
  func.func @transform_6(%arg0: i32, %arg1: i32) -> (i32, i32) {
    %c0_i32 = arith.constant 0 : i32
    %c0_i32_0 = arith.constant 0 : i32
    %c0_i32_1 = arith.constant 0 : i32
    return %c0_i32, %c0_i32_0 : i32, i32
  }
  func.func @transform_7(%arg0: i32, %arg1: i32) -> (i32, i32) {
    %c0_i32 = arith.constant 0 : i32
    %c0_i32_0 = arith.constant 0 : i32
    %c0_i32_1 = arith.constant 0 : i32
    return %c0_i32, %c0_i32_0 : i32, i32
  }
  func.func @transform_8(%arg0: i32, %arg1: i32) -> (i32, i32) {
    %c0_i32 = arith.constant 0 : i32
    %c0_i32_0 = arith.constant 0 : i32
    %c0_i32_1 = arith.constant 0 : i32
    return %c0_i32, %c0_i32_0 : i32, i32
  }
  func.func @transform_9(%arg0: i32, %arg1: i32) -> (i32, i32) {
    %c0_i32 = arith.constant 0 : i32
    %c0_i32_0 = arith.constant 0 : i32
    %c0_i32_1 = arith.constant 0 : i32
    return %c0_i32, %c0_i32_0 : i32, i32
  }
  func.func @transform_10(%arg0: i32, %arg1: i32) -> (i32, i32) {
    %c0_i32 = arith.constant 0 : i32
    %c0_i32_0 = arith.constant 0 : i32
    %c0_i32_1 = arith.constant 0 : i32
    return %c0_i32, %c0_i32_0 : i32, i32
  }
  func.func @transform_11(%arg0: i32, %arg1: i32) -> (i32, i32) {
    %c0_i32 = arith.constant 0 : i32
    %c0_i32_0 = arith.constant 0 : i32
    %c0_i32_1 = arith.constant 0 : i32
    return %c0_i32, %c0_i32_0 : i32, i32
  }
  func.func @transform_12(%arg0: i32, %arg1: i32) -> (i32, i32) {
    %c0_i32 = arith.constant 0 : i32
    %c0_i32_0 = arith.constant 0 : i32
    %c0_i32_1 = arith.constant 0 : i32
    return %c0_i32, %c0_i32_0 : i32, i32
  }
  func.func @transform_13(%arg0: i32, %arg1: i32) -> (i32, i32) {
    %c0_i32 = arith.constant 0 : i32
    %c0_i32_0 = arith.constant 0 : i32
    %c0_i32_1 = arith.constant 0 : i32
    return %c0_i32, %c0_i32_0 : i32, i32
  }
  func.func @transform_14(%arg0: i32, %arg1: i32) -> (i32, i32, i32) {
    %c0_i32 = arith.constant 0 : i32
    %c0_i32_0 = arith.constant 0 : i32
    return %arg0, %arg1, %c0_i32 : i32, i32, i32
  }
}

module attributes {stable_mosaic.version = 11 : i64} {
  func.func @self_attn_block_kernel(%arg0: i32, %arg1: i32, %arg2: memref<1x8x32xf32, #tpu.memory_space<vmem>>, %arg3: memref<1x8x32xbf16, #tpu.memory_space<vmem>>, %arg4: memref<32x32xbf16, #tpu.memory_space<vmem>>, %arg5: memref<1x32xf32, #tpu.memory_space<vmem>>, %arg6: memref<32x64xbf16, #tpu.memory_space<vmem>>, %arg7: memref<1x64xf32, #tpu.memory_space<vmem>>, %arg8: memref<1x32xf32, #tpu.memory_space<vmem>>, %arg9: memref<1x32xf32, #tpu.memory_space<vmem>>, %arg10: memref<128x32xbf16, #tpu.memory_space<vmem>>, %arg11: memref<1x128xf32, #tpu.memory_space<vmem>>, %arg12: memref<128x32xbf16, #tpu.memory_space<vmem>>, %arg13: memref<1x32xf32, #tpu.memory_space<vmem>>, %arg14: memref<1x32xf32, #tpu.memory_space<vmem>>, %arg15: memref<1x32xf32, #tpu.memory_space<vmem>>, %arg16: memref<1x8x32xf32, #tpu.memory_space<vmem>>, %arg17: memref<4x8x8xbf16, #tpu.memory_space<vmem>>, %arg18: memref<4x8x8xbf16, #tpu.memory_space<vmem>>, %arg19: memref<4x8x8xbf16, #tpu.memory_space<vmem>>, %arg20: memref<8x32xf32, #tpu.memory_space<vmem>>) attributes {dimension_semantics = [#tpu.dimension_semantics<parallel>, #tpu.dimension_semantics<arbitrary>], iteration_bounds = array<i64: 2, 1>, scalar_prefetch = 0 : i64, scratch_operands = 4 : i64, tpu.core_type = #tpu.core_type<tc>, window_params = [{transform_indices = @transform_0, window_bounds = array<i64: 1, 8, 32>}, {transform_indices = @transform_1, window_bounds = array<i64: 1, 8, 32>}, {pipeline_mode = #tpu.pipeline_mode<synchronous>, transform_indices = @transform_2, window_bounds = array<i64: 32, 32>}, {pipeline_mode = #tpu.pipeline_mode<synchronous>, transform_indices = @transform_3, window_bounds = array<i64: 1, 32>}, {pipeline_mode = #tpu.pipeline_mode<synchronous>, transform_indices = @transform_4, window_bounds = array<i64: 32, 64>}, {pipeline_mode = #tpu.pipeline_mode<synchronous>, transform_indices = @transform_5, window_bounds = array<i64: 1, 64>}, {pipeline_mode = #tpu.pipeline_mode<synchronous>, transform_indices = @transform_6, window_bounds = array<i64: 1, 32>}, {pipeline_mode = #tpu.pipeline_mode<synchronous>, transform_indices = @transform_7, window_bounds = array<i64: 1, 32>}, {pipeline_mode = #tpu.pipeline_mode<synchronous>, transform_indices = @transform_8, window_bounds = array<i64: 128, 32>}, {pipeline_mode = #tpu.pipeline_mode<synchronous>, transform_indices = @transform_9, window_bounds = array<i64: 1, 128>}, {pipeline_mode = #tpu.pipeline_mode<synchronous>, transform_indices = @transform_10, window_bounds = array<i64: 128, 32>}, {pipeline_mode = #tpu.pipeline_mode<synchronous>, transform_indices = @transform_11, window_bounds = array<i64: 1, 32>}, {pipeline_mode = #tpu.pipeline_mode<synchronous>, transform_indices = @transform_12, window_bounds = array<i64: 1, 32>}, {pipeline_mode = #tpu.pipeline_mode<synchronous>, transform_indices = @transform_13, window_bounds = array<i64: 1, 32>}, {transform_indices = @transform_14, window_bounds = array<i64: 1, 8, 32>}]} {
    %c0_i32 = arith.constant 0 : i32
    %0 = arith.cmpi eq, %arg1, %c0_i32 : i32
    %1 = arith.extui %0 : i1 to i32
    %c0_i32_0 = arith.constant 0 : i32
    %2 = arith.cmpi ne, %1, %c0_i32_0 : i32
    scf.if %2 {
      %c0_71 = arith.constant 0 : index
      %c0_72 = arith.constant 0 : index
      %c0_73 = arith.constant 0 : index
      %151 = vector.load %arg3[%c0_71, %c0_72, %c0_73] : memref<1x8x32xbf16, #tpu.memory_space<vmem>>, vector<1x8x32xbf16>
      %152 = vector.shape_cast %151 : vector<1x8x32xbf16> to vector<8x32xbf16>
      %c0_74 = arith.constant 0 : index
      %c0_75 = arith.constant 0 : index
      %153 = vector.load %arg6[%c0_74, %c0_75] : memref<32x64xbf16, #tpu.memory_space<vmem>>, vector<32x64xbf16>
      %cst_76 = arith.constant dense<0.000000e+00> : vector<8x64xf32>
      %154 = tpu.matmul %152, %153, %cst_76 {dimension_numbers = #tpu.dot_dimension_numbers<[1], [0], [0], [1], [0, 0, 1, 1], [], []>} : vector<8x32xbf16>, vector<32x64xbf16>, vector<8x64xf32> -> vector<8x64xf32>
      %c0_77 = arith.constant 0 : index
      %c0_78 = arith.constant 0 : index
      %155 = vector.load %arg7[%c0_77, %c0_78] : memref<1x64xf32, #tpu.memory_space<vmem>>, vector<1x64xf32>
      %156 = vector.broadcast %155 : vector<1x64xf32> to vector<8x64xf32>
      %157 = arith.addf %154, %156 : vector<8x64xf32>
      %158 = vector.extract_strided_slice %157 {offsets = [0, 0], sizes = [8, 8], strides = [1, 1]} : vector<8x64xf32> to vector<8x8xf32>
      %159 = arith.truncf %158 : vector<8x8xf32> to vector<8x8xbf16>
      %c0_79 = arith.constant 0 : index
      %c0_80 = arith.constant 0 : index
      %c0_81 = arith.constant 0 : index
      %160 = vector.load %arg18[%c0_79, %c0_80, %c0_81] : memref<4x8x8xbf16, #tpu.memory_space<vmem>>, vector<1x8x8xbf16>
      %161 = vector.shape_cast %160 : vector<1x8x8xbf16> to vector<8x8xbf16>
      %162 = vector.shape_cast %159 : vector<8x8xbf16> to vector<1x8x8xbf16>
      tpu.vector_store %arg18[%c0_79, %c0_80, %c0_81], %162 {strides = array<i32>} : memref<4x8x8xbf16, #tpu.memory_space<vmem>>, vector<1x8x8xbf16>,
      %163 = vector.extract_strided_slice %157 {offsets = [0, 32], sizes = [8, 8], strides = [1, 1]} : vector<8x64xf32> to vector<8x8xf32>
      %164 = arith.truncf %163 : vector<8x8xf32> to vector<8x8xbf16>
      %c0_82 = arith.constant 0 : index
      %c0_83 = arith.constant 0 : index
      %c0_84 = arith.constant 0 : index
      %165 = vector.load %arg19[%c0_82, %c0_83, %c0_84] : memref<4x8x8xbf16, #tpu.memory_space<vmem>>, vector<1x8x8xbf16>
      %166 = vector.shape_cast %165 : vector<1x8x8xbf16> to vector<8x8xbf16>
      %167 = vector.shape_cast %164 : vector<8x8xbf16> to vector<1x8x8xbf16>
      tpu.vector_store %arg19[%c0_82, %c0_83, %c0_84], %167 {strides = array<i32>} : memref<4x8x8xbf16, #tpu.memory_space<vmem>>, vector<1x8x8xbf16>,
      %168 = vector.extract_strided_slice %157 {offsets = [0, 8], sizes = [8, 8], strides = [1, 1]} : vector<8x64xf32> to vector<8x8xf32>
      %169 = arith.truncf %168 : vector<8x8xf32> to vector<8x8xbf16>
      %c1_85 = arith.constant 1 : index
      %c0_86 = arith.constant 0 : index
      %c0_87 = arith.constant 0 : index
      %170 = vector.load %arg18[%c1_85, %c0_86, %c0_87] : memref<4x8x8xbf16, #tpu.memory_space<vmem>>, vector<1x8x8xbf16>
      %171 = vector.shape_cast %170 : vector<1x8x8xbf16> to vector<8x8xbf16>
      %172 = vector.shape_cast %169 : vector<8x8xbf16> to vector<1x8x8xbf16>
      tpu.vector_store %arg18[%c1_85, %c0_86, %c0_87], %172 {strides = array<i32>} : memref<4x8x8xbf16, #tpu.memory_space<vmem>>, vector<1x8x8xbf16>,
      %173 = vector.extract_strided_slice %157 {offsets = [0, 40], sizes = [8, 8], strides = [1, 1]} : vector<8x64xf32> to vector<8x8xf32>
      %174 = arith.truncf %173 : vector<8x8xf32> to vector<8x8xbf16>
      %c1_88 = arith.constant 1 : index
      %c0_89 = arith.constant 0 : index
      %c0_90 = arith.constant 0 : index
      %175 = vector.load %arg19[%c1_88, %c0_89, %c0_90] : memref<4x8x8xbf16, #tpu.memory_space<vmem>>, vector<1x8x8xbf16>
      %176 = vector.shape_cast %175 : vector<1x8x8xbf16> to vector<8x8xbf16>
      %177 = vector.shape_cast %174 : vector<8x8xbf16> to vector<1x8x8xbf16>
      tpu.vector_store %arg19[%c1_88, %c0_89, %c0_90], %177 {strides = array<i32>} : memref<4x8x8xbf16, #tpu.memory_space<vmem>>, vector<1x8x8xbf16>,
      %178 = vector.extract_strided_slice %157 {offsets = [0, 16], sizes = [8, 8], strides = [1, 1]} : vector<8x64xf32> to vector<8x8xf32>
      %179 = arith.truncf %178 : vector<8x8xf32> to vector<8x8xbf16>
      %c2_91 = arith.constant 2 : index
      %c0_92 = arith.constant 0 : index
      %c0_93 = arith.constant 0 : index
      %180 = vector.load %arg18[%c2_91, %c0_92, %c0_93] : memref<4x8x8xbf16, #tpu.memory_space<vmem>>, vector<1x8x8xbf16>
      %181 = vector.shape_cast %180 : vector<1x8x8xbf16> to vector<8x8xbf16>
      %182 = vector.shape_cast %179 : vector<8x8xbf16> to vector<1x8x8xbf16>
      tpu.vector_store %arg18[%c2_91, %c0_92, %c0_93], %182 {strides = array<i32>} : memref<4x8x8xbf16, #tpu.memory_space<vmem>>, vector<1x8x8xbf16>,
      %183 = vector.extract_strided_slice %157 {offsets = [0, 48], sizes = [8, 8], strides = [1, 1]} : vector<8x64xf32> to vector<8x8xf32>
      %184 = arith.truncf %183 : vector<8x8xf32> to vector<8x8xbf16>
      %c2_94 = arith.constant 2 : index
      %c0_95 = arith.constant 0 : index
      %c0_96 = arith.constant 0 : index
      %185 = vector.load %arg19[%c2_94, %c0_95, %c0_96] : memref<4x8x8xbf16, #tpu.memory_space<vmem>>, vector<1x8x8xbf16>
      %186 = vector.shape_cast %185 : vector<1x8x8xbf16> to vector<8x8xbf16>
      %187 = vector.shape_cast %184 : vector<8x8xbf16> to vector<1x8x8xbf16>
      tpu.vector_store %arg19[%c2_94, %c0_95, %c0_96], %187 {strides = array<i32>} : memref<4x8x8xbf16, #tpu.memory_space<vmem>>, vector<1x8x8xbf16>,
      %188 = vector.extract_strided_slice %157 {offsets = [0, 24], sizes = [8, 8], strides = [1, 1]} : vector<8x64xf32> to vector<8x8xf32>
      %189 = arith.truncf %188 : vector<8x8xf32> to vector<8x8xbf16>
      %c3_97 = arith.constant 3 : index
      %c0_98 = arith.constant 0 : index
      %c0_99 = arith.constant 0 : index
      %190 = vector.load %arg18[%c3_97, %c0_98, %c0_99] : memref<4x8x8xbf16, #tpu.memory_space<vmem>>, vector<1x8x8xbf16>
      %191 = vector.shape_cast %190 : vector<1x8x8xbf16> to vector<8x8xbf16>
      %192 = vector.shape_cast %189 : vector<8x8xbf16> to vector<1x8x8xbf16>
      tpu.vector_store %arg18[%c3_97, %c0_98, %c0_99], %192 {strides = array<i32>} : memref<4x8x8xbf16, #tpu.memory_space<vmem>>, vector<1x8x8xbf16>,
      %193 = vector.extract_strided_slice %157 {offsets = [0, 56], sizes = [8, 8], strides = [1, 1]} : vector<8x64xf32> to vector<8x8xf32>
      %194 = arith.truncf %193 : vector<8x8xf32> to vector<8x8xbf16>
      %c3_100 = arith.constant 3 : index
      %c0_101 = arith.constant 0 : index
      %c0_102 = arith.constant 0 : index
      %195 = vector.load %arg19[%c3_100, %c0_101, %c0_102] : memref<4x8x8xbf16, #tpu.memory_space<vmem>>, vector<1x8x8xbf16>
      %196 = vector.shape_cast %195 : vector<1x8x8xbf16> to vector<8x8xbf16>
      %197 = vector.shape_cast %194 : vector<8x8xbf16> to vector<1x8x8xbf16>
      tpu.vector_store %arg19[%c3_100, %c0_101, %c0_102], %197 {strides = array<i32>} : memref<4x8x8xbf16, #tpu.memory_space<vmem>>, vector<1x8x8xbf16>,
    } else {
    }
    %c0 = arith.constant 0 : index
    %c0_1 = arith.constant 0 : index
    %c0_2 = arith.constant 0 : index
    %3 = vector.load %arg2[%c0, %c0_1, %c0_2] : memref<1x8x32xf32, #tpu.memory_space<vmem>>, vector<1x8x32xf32>
    %4 = vector.shape_cast %3 : vector<1x8x32xf32> to vector<8x32xf32>
    %5 = arith.truncf %4 : vector<8x32xf32> to vector<8x32xbf16>
    %c0_3 = arith.constant 0 : index
    %c0_4 = arith.constant 0 : index
    %6 = vector.load %arg4[%c0_3, %c0_4] : memref<32x32xbf16, #tpu.memory_space<vmem>>, vector<32x32xbf16>
    %cst = arith.constant dense<0.000000e+00> : vector<8x32xf32>
    %7 = tpu.matmul %5, %6, %cst {dimension_numbers = #tpu.dot_dimension_numbers<[1], [0], [0], [1], [0, 0, 1, 1], [], []>} : vector<8x32xbf16>, vector<32x32xbf16>, vector<8x32xf32> -> vector<8x32xf32>
    %c0_5 = arith.constant 0 : index
    %c0_6 = arith.constant 0 : index
    %8 = vector.load %arg5[%c0_5, %c0_6] : memref<1x32xf32, #tpu.memory_space<vmem>>, vector<1x32xf32>
    %9 = vector.broadcast %8 : vector<1x32xf32> to vector<8x32xf32>
    %10 = arith.addf %7, %9 : vector<8x32xf32>
    %cst_7 = arith.constant 0.353553385 : f32
    %11 = vector.broadcast %cst_7 : f32 to vector<8x32xf32>
    %12 = arith.mulf %10, %11 : vector<8x32xf32>
    %13 = vector.extract_strided_slice %12 {offsets = [0, 0], sizes = [8, 8], strides = [1, 1]} : vector<8x32xf32> to vector<8x8xf32>
    %14 = arith.truncf %13 : vector<8x8xf32> to vector<8x8xbf16>
    %c0_8 = arith.constant 0 : index
    %c0_9 = arith.constant 0 : index
    %c0_10 = arith.constant 0 : index
    %15 = vector.load %arg17[%c0_8, %c0_9, %c0_10] : memref<4x8x8xbf16, #tpu.memory_space<vmem>>, vector<1x8x8xbf16>
    %16 = vector.shape_cast %15 : vector<1x8x8xbf16> to vector<8x8xbf16>
    %17 = vector.shape_cast %14 : vector<8x8xbf16> to vector<1x8x8xbf16>
    tpu.vector_store %arg17[%c0_8, %c0_9, %c0_10], %17 {strides = array<i32>} : memref<4x8x8xbf16, #tpu.memory_space<vmem>>, vector<1x8x8xbf16>,
    %18 = vector.extract_strided_slice %12 {offsets = [0, 8], sizes = [8, 8], strides = [1, 1]} : vector<8x32xf32> to vector<8x8xf32>
    %19 = arith.truncf %18 : vector<8x8xf32> to vector<8x8xbf16>
    %c1 = arith.constant 1 : index
    %c0_11 = arith.constant 0 : index
    %c0_12 = arith.constant 0 : index
    %20 = vector.load %arg17[%c1, %c0_11, %c0_12] : memref<4x8x8xbf16, #tpu.memory_space<vmem>>, vector<1x8x8xbf16>
    %21 = vector.shape_cast %20 : vector<1x8x8xbf16> to vector<8x8xbf16>
    %22 = vector.shape_cast %19 : vector<8x8xbf16> to vector<1x8x8xbf16>
    tpu.vector_store %arg17[%c1, %c0_11, %c0_12], %22 {strides = array<i32>} : memref<4x8x8xbf16, #tpu.memory_space<vmem>>, vector<1x8x8xbf16>,
    %23 = vector.extract_strided_slice %12 {offsets = [0, 16], sizes = [8, 8], strides = [1, 1]} : vector<8x32xf32> to vector<8x8xf32>
    %24 = arith.truncf %23 : vector<8x8xf32> to vector<8x8xbf16>
    %c2 = arith.constant 2 : index
    %c0_13 = arith.constant 0 : index
    %c0_14 = arith.constant 0 : index
    %25 = vector.load %arg17[%c2, %c0_13, %c0_14] : memref<4x8x8xbf16, #tpu.memory_space<vmem>>, vector<1x8x8xbf16>
    %26 = vector.shape_cast %25 : vector<1x8x8xbf16> to vector<8x8xbf16>
    %27 = vector.shape_cast %24 : vector<8x8xbf16> to vector<1x8x8xbf16>
    tpu.vector_store %arg17[%c2, %c0_13, %c0_14], %27 {strides = array<i32>} : memref<4x8x8xbf16, #tpu.memory_space<vmem>>, vector<1x8x8xbf16>,
    %28 = vector.extract_strided_slice %12 {offsets = [0, 24], sizes = [8, 8], strides = [1, 1]} : vector<8x32xf32> to vector<8x8xf32>
    %29 = arith.truncf %28 : vector<8x8xf32> to vector<8x8xbf16>
    %c3 = arith.constant 3 : index
    %c0_15 = arith.constant 0 : index
    %c0_16 = arith.constant 0 : index
    %30 = vector.load %arg17[%c3, %c0_15, %c0_16] : memref<4x8x8xbf16, #tpu.memory_space<vmem>>, vector<1x8x8xbf16>
    %31 = vector.shape_cast %30 : vector<1x8x8xbf16> to vector<8x8xbf16>
    %32 = vector.shape_cast %29 : vector<8x8xbf16> to vector<1x8x8xbf16>
    tpu.vector_store %arg17[%c3, %c0_15, %c0_16], %32 {strides = array<i32>} : memref<4x8x8xbf16, #tpu.memory_space<vmem>>, vector<1x8x8xbf16>,
    %c0_17 = arith.constant 0 : index
    %c0_18 = arith.constant 0 : index
    %c0_19 = arith.constant 0 : index
    %33 = vector.load %arg17[%c0_17, %c0_18, %c0_19] : memref<4x8x8xbf16, #tpu.memory_space<vmem>>, vector<4x8x8xbf16>
    %cst_20 = arith.constant 0xFF800000 : f32
    %34 = vector.broadcast %cst_20 : f32 to vector<4x8x1xf32>
    %cst_21 = arith.constant 0.000000e+00 : f32
    %35 = vector.broadcast %cst_21 : f32 to vector<4x8x1xf32>
    %cst_22 = arith.constant 0.000000e+00 : f32
    %36 = vector.broadcast %cst_22 : f32 to vector<4x8x8xf32>
    %c0_i32_23 = arith.constant 0 : i32
    %c8_i32 = arith.constant 8 : i32
    %37 = arith.muli %c0_i32_23, %c8_i32 : i32
    %38 = tpu.assume_multiple %37, 8 : i32
    %c0_24 = arith.constant 0 : index
    %39 = arith.index_cast %38 : i32 to index
    %c0_25 = arith.constant 0 : index
    %40 = vector.load %arg18[%c0_24, %39, %c0_25] : memref<4x8x8xbf16, #tpu.memory_space<vmem>>, vector<4x8x8xbf16>
    %c0_26 = arith.constant 0 : index
    %41 = arith.index_cast %38 : i32 to index
    %c0_27 = arith.constant 0 : index
    %42 = vector.load %arg19[%c0_26, %41, %c0_27] : memref<4x8x8xbf16, #tpu.memory_space<vmem>>, vector<4x8x8xbf16>
    "tpu.trace_start"() <{level = 10 : i32, message = "hqd,hkd->hqk"}> : () -> ()
    %cst_28 = arith.constant dense<0.000000e+00> : vector<4x8x8xf32>
    %43 = tpu.matmul %33, %40, %cst_28 {dimension_numbers = #tpu.dot_dimension_numbers<[2], [2], [1], [1], [0, 0, 0, 1, 1, 1], [0], [0]>} : vector<4x8x8xbf16>, vector<4x8x8xbf16>, vector<4x8x8xf32> -> vector<4x8x8xf32>
    "tpu.trace_stop"() : () -> ()
    %cst_29 = arith.constant dense<0xFF800000> : vector<4x8xf32>
    %44 = vector.multi_reduction <maximumf>, %43, %cst_29 [2] : vector<4x8x8xf32> to vector<4x8xf32>
    %45 = vector.shape_cast %44 : vector<4x8xf32> to vector<4x8x1xf32>
    %46 = arith.maximumf %34, %45 : vector<4x8x1xf32>
    %47 = arith.subf %34, %46 : vector<4x8x1xf32>
    %48 = math.exp %47 : vector<4x8x1xf32>
    %49 = vector.broadcast %46 : vector<4x8x1xf32> to vector<4x8x8xf32>
    %50 = arith.subf %43, %49 : vector<4x8x8xf32>
    %51 = math.exp %50 : vector<4x8x8xf32>
    %52 = arith.mulf %48, %35 : vector<4x8x1xf32>
    %cst_30 = arith.constant dense<0.000000e+00> : vector<4x8xf32>
    %53 = vector.multi_reduction <add>, %51, %cst_30 [2] : vector<4x8x8xf32> to vector<4x8xf32>
    %54 = vector.shape_cast %53 : vector<4x8xf32> to vector<4x8x1xf32>
    %55 = arith.addf %52, %54 : vector<4x8x1xf32>
    %56 = vector.broadcast %48 : vector<4x8x1xf32> to vector<4x8x8xf32>
    %57 = arith.mulf %56, %36 : vector<4x8x8xf32>
    %58 = arith.truncf %51 : vector<4x8x8xf32> to vector<4x8x8xbf16>
    "tpu.trace_start"() <{level = 10 : i32, message = "hqk,hkd->hqd"}> : () -> ()
    %cst_31 = arith.constant dense<0.000000e+00> : vector<4x8x8xf32>
    %59 = tpu.matmul %58, %42, %cst_31 {dimension_numbers = #tpu.dot_dimension_numbers<[2], [1], [1], [2], [0, 0, 0, 1, 1, 2], [0], [0]>} : vector<4x8x8xbf16>, vector<4x8x8xbf16>, vector<4x8x8xf32> -> vector<4x8x8xf32>
    "tpu.trace_stop"() : () -> ()
    %60 = arith.addf %57, %59 : vector<4x8x8xf32>
    %c1_i32 = arith.constant 1 : i32
    %61 = tpu.reciprocal %55 {approx = true} : vector<4x8x1xf32> -> vector<4x8x1xf32>
    %62 = vector.broadcast %61 : vector<4x8x1xf32> to vector<4x8x8xf32>
    %63 = arith.mulf %60, %62 : vector<4x8x8xf32>
    %64 = vector.extract_strided_slice %63 {offsets = [0, 0, 0], sizes = [1, 8, 8], strides = [1, 1, 1]} : vector<4x8x8xf32> to vector<1x8x8xf32>
    %65 = vector.shape_cast %64 : vector<1x8x8xf32> to vector<8x8xf32>
    %c0_32 = arith.constant 0 : index
    %c0_33 = arith.constant 0 : index
    %66 = vector.load %arg20[%c0_32, %c0_33] : memref<8x32xf32, #tpu.memory_space<vmem>>, vector<8x8xf32>
    tpu.vector_store %arg20[%c0_32, %c0_33], %65 {strides = array<i32>} : memref<8x32xf32, #tpu.memory_space<vmem>>, vector<8x8xf32>,
    %67 = vector.extract_strided_slice %63 {offsets = [1, 0, 0], sizes = [1, 8, 8], strides = [1, 1, 1]} : vector<4x8x8xf32> to vector<1x8x8xf32>
    %68 = vector.shape_cast %67 : vector<1x8x8xf32> to vector<8x8xf32>
    %c0_34 = arith.constant 0 : index
    %c8 = arith.constant 8 : index
    %69 = vector.load %arg20[%c0_34, %c8] : memref<8x32xf32, #tpu.memory_space<vmem>>, vector<8x8xf32>
    tpu.vector_store %arg20[%c0_34, %c8], %68 {strides = array<i32>} : memref<8x32xf32, #tpu.memory_space<vmem>>, vector<8x8xf32>,
    %70 = vector.extract_strided_slice %63 {offsets = [2, 0, 0], sizes = [1, 8, 8], strides = [1, 1, 1]} : vector<4x8x8xf32> to vector<1x8x8xf32>
    %71 = vector.shape_cast %70 : vector<1x8x8xf32> to vector<8x8xf32>
    %c0_35 = arith.constant 0 : index
    %c16 = arith.constant 16 : index
    %72 = vector.load %arg20[%c0_35, %c16] : memref<8x32xf32, #tpu.memory_space<vmem>>, vector<8x8xf32>
    tpu.vector_store %arg20[%c0_35, %c16], %71 {strides = array<i32>} : memref<8x32xf32, #tpu.memory_space<vmem>>, vector<8x8xf32>,
    %73 = vector.extract_strided_slice %63 {offsets = [3, 0, 0], sizes = [1, 8, 8], strides = [1, 1, 1]} : vector<4x8x8xf32> to vector<1x8x8xf32>
    %74 = vector.shape_cast %73 : vector<1x8x8xf32> to vector<8x8xf32>
    %c0_36 = arith.constant 0 : index
    %c24 = arith.constant 24 : index
    %75 = vector.load %arg20[%c0_36, %c24] : memref<8x32xf32, #tpu.memory_space<vmem>>, vector<8x8xf32>
    tpu.vector_store %arg20[%c0_36, %c24], %74 {strides = array<i32>} : memref<8x32xf32, #tpu.memory_space<vmem>>, vector<8x8xf32>,
    %c0_37 = arith.constant 0 : index
    %c0_38 = arith.constant 0 : index
    %76 = vector.load %arg20[%c0_37, %c0_38] : memref<8x32xf32, #tpu.memory_space<vmem>>, vector<8x32xf32>
    %77 = arith.addf %4, %76 : vector<8x32xf32>
    %c0_39 = arith.constant 0 : index
    %c0_40 = arith.constant 0 : index
    %78 = vector.load %arg8[%c0_39, %c0_40] : memref<1x32xf32, #tpu.memory_space<vmem>>, vector<1x32xf32>
    %c0_41 = arith.constant 0 : index
    %c0_42 = arith.constant 0 : index
    %79 = vector.load %arg9[%c0_41, %c0_42] : memref<1x32xf32, #tpu.memory_space<vmem>>, vector<1x32xf32>
    %cst_43 = arith.constant dense<0.000000e+00> : vector<8xf32>
    %80 = vector.multi_reduction <add>, %77, %cst_43 [1] : vector<8x32xf32> to vector<8xf32>
    %81 = vector.shape_cast %80 : vector<8xf32> to vector<8x1xf32>
    %cst_44 = arith.constant 3.200000e+01 : f32
    %82 = vector.broadcast %cst_44 : f32 to vector<8x1xf32>
    %83 = arith.divf %81, %82 : vector<8x1xf32>
    %84 = vector.broadcast %83 : vector<8x1xf32> to vector<8x32xf32>
    %85 = arith.subf %77, %84 : vector<8x32xf32>
    %86 = arith.mulf %85, %85 : vector<8x32xf32>
    %cst_45 = arith.constant dense<0.000000e+00> : vector<8xf32>
    %87 = vector.multi_reduction <add>, %86, %cst_45 [1] : vector<8x32xf32> to vector<8xf32>
    %88 = vector.shape_cast %87 : vector<8xf32> to vector<8x1xf32>
    %cst_46 = arith.constant 3.200000e+01 : f32
    %89 = vector.broadcast %cst_46 : f32 to vector<8x1xf32>
    %90 = arith.divf %88, %89 : vector<8x1xf32>
    %cst_47 = arith.constant 9.99999974E-6 : f32
    %91 = vector.broadcast %cst_47 : f32 to vector<8x1xf32>
    %92 = arith.addf %90, %91 : vector<8x1xf32>
    %93 = math.rsqrt %92 : vector<8x1xf32>
    %94 = vector.broadcast %83 : vector<8x1xf32> to vector<8x32xf32>
    %95 = arith.subf %77, %94 : vector<8x32xf32>
    %96 = vector.broadcast %93 : vector<8x1xf32> to vector<8x32xf32>
    %97 = arith.mulf %95, %96 : vector<8x32xf32>
    %98 = vector.broadcast %78 : vector<1x32xf32> to vector<8x32xf32>
    %99 = arith.mulf %97, %98 : vector<8x32xf32>
    %100 = vector.broadcast %79 : vector<1x32xf32> to vector<8x32xf32>
    %101 = arith.addf %99, %100 : vector<8x32xf32>
    %102 = arith.truncf %101 : vector<8x32xf32> to vector<8x32xbf16>
    %cst_48 = arith.constant 0.000000e+00 : f32
    %103 = vector.broadcast %cst_48 : f32 to vector<8x32xf32>
    %c0_i32_49 = arith.constant 0 : i32
    %c128_i32 = arith.constant 128 : i32
    %104 = arith.muli %c0_i32_49, %c128_i32 : i32
    %105 = tpu.assume_multiple %104, 128 : i32
    %106 = arith.index_cast %105 : i32 to index
    %c0_50 = arith.constant 0 : index
    %107 = vector.load %arg10[%106, %c0_50] : memref<128x32xbf16, #tpu.memory_space<vmem>>, vector<128x32xbf16>
    %108 = arith.index_cast %c0_i32_49 : i32 to index
    %c0_51 = arith.constant 0 : index
    %109 = vector.load %arg11[%108, %c0_51] : memref<1x128xf32, #tpu.memory_space<vmem>>, vector<1x128xf32>
    %cst_52 = arith.constant dense<0.000000e+00> : vector<8x128xf32>
    %110 = tpu.matmul %102, %107, %cst_52 {dimension_numbers = #tpu.dot_dimension_numbers<[1], [1], [0], [0], [0, 0, 1, 0], [], []>} : vector<8x32xbf16>, vector<128x32xbf16>, vector<8x128xf32> -> vector<8x128xf32>
    %111 = vector.broadcast %109 : vector<1x128xf32> to vector<8x128xf32>
    %112 = arith.addf %110, %111 : vector<8x128xf32>
    %cst_53 = arith.constant 0.000000e+00 : f32
    %113 = vector.broadcast %cst_53 : f32 to vector<8x128xf32>
    %114 = arith.maximumf %112, %113 : vector<8x128xf32>
    %115 = arith.index_cast %105 : i32 to index
    %c0_54 = arith.constant 0 : index
    %116 = vector.load %arg12[%115, %c0_54] : memref<128x32xbf16, #tpu.memory_space<vmem>>, vector<128x32xbf16>
    %117 = arith.truncf %114 : vector<8x128xf32> to vector<8x128xbf16>
    %cst_55 = arith.constant dense<0.000000e+00> : vector<8x32xf32>
    %118 = tpu.matmul %117, %116, %cst_55 {dimension_numbers = #tpu.dot_dimension_numbers<[1], [0], [0], [1], [0, 0, 1, 1], [], []>} : vector<8x128xbf16>, vector<128x32xbf16>, vector<8x32xf32> -> vector<8x32xf32>
    %119 = arith.addf %103, %118 : vector<8x32xf32>
    %c1_i32_56 = arith.constant 1 : i32
    %c0_57 = arith.constant 0 : index
    %c0_58 = arith.constant 0 : index
    %120 = vector.load %arg13[%c0_57, %c0_58] : memref<1x32xf32, #tpu.memory_space<vmem>>, vector<1x32xf32>
    %121 = vector.broadcast %120 : vector<1x32xf32> to vector<8x32xf32>
    %122 = arith.addf %119, %121 : vector<8x32xf32>
    %123 = arith.addf %101, %122 : vector<8x32xf32>
    %c0_59 = arith.constant 0 : index
    %c0_60 = arith.constant 0 : index
    %124 = vector.load %arg14[%c0_59, %c0_60] : memref<1x32xf32, #tpu.memory_space<vmem>>, vector<1x32xf32>
    %c0_61 = arith.constant 0 : index
    %c0_62 = arith.constant 0 : index
    %125 = vector.load %arg15[%c0_61, %c0_62] : memref<1x32xf32, #tpu.memory_space<vmem>>, vector<1x32xf32>
    %cst_63 = arith.constant dense<0.000000e+00> : vector<8xf32>
    %126 = vector.multi_reduction <add>, %123, %cst_63 [1] : vector<8x32xf32> to vector<8xf32>
    %127 = vector.shape_cast %126 : vector<8xf32> to vector<8x1xf32>
    %cst_64 = arith.constant 3.200000e+01 : f32
    %128 = vector.broadcast %cst_64 : f32 to vector<8x1xf32>
    %129 = arith.divf %127, %128 : vector<8x1xf32>
    %130 = vector.broadcast %129 : vector<8x1xf32> to vector<8x32xf32>
    %131 = arith.subf %123, %130 : vector<8x32xf32>
    %132 = arith.mulf %131, %131 : vector<8x32xf32>
    %cst_65 = arith.constant dense<0.000000e+00> : vector<8xf32>
    %133 = vector.multi_reduction <add>, %132, %cst_65 [1] : vector<8x32xf32> to vector<8xf32>
    %134 = vector.shape_cast %133 : vector<8xf32> to vector<8x1xf32>
    %cst_66 = arith.constant 3.200000e+01 : f32
    %135 = vector.broadcast %cst_66 : f32 to vector<8x1xf32>
    %136 = arith.divf %134, %135 : vector<8x1xf32>
    %cst_67 = arith.constant 9.99999974E-6 : f32
    %137 = vector.broadcast %cst_67 : f32 to vector<8x1xf32>
    %138 = arith.addf %136, %137 : vector<8x1xf32>
    %139 = math.rsqrt %138 : vector<8x1xf32>
    %140 = vector.broadcast %129 : vector<8x1xf32> to vector<8x32xf32>
    %141 = arith.subf %123, %140 : vector<8x32xf32>
    %142 = vector.broadcast %139 : vector<8x1xf32> to vector<8x32xf32>
    %143 = arith.mulf %141, %142 : vector<8x32xf32>
    %144 = vector.broadcast %124 : vector<1x32xf32> to vector<8x32xf32>
    %145 = arith.mulf %143, %144 : vector<8x32xf32>
    %146 = vector.broadcast %125 : vector<1x32xf32> to vector<8x32xf32>
    %147 = arith.addf %145, %146 : vector<8x32xf32>
    %c0_68 = arith.constant 0 : index
    %c0_69 = arith.constant 0 : index
    %c0_70 = arith.constant 0 : index
    %148 = vector.load %arg16[%c0_68, %c0_69, %c0_70] : memref<1x8x32xf32, #tpu.memory_space<vmem>>, vector<1x8x32xf32>
    %149 = vector.shape_cast %148 : vector<1x8x32xf32> to vector<8x32xf32>
    %150 = vector.shape_cast %147 : vector<8x32xf32> to vector<1x8x32xf32>
    tpu.vector_store %arg16[%c0_68, %c0_69, %c0_70], %150 {strides = array<i32>} : memref<1x8x32xf32, #tpu.memory_space<vmem>>, vector<1x8x32xf32>,
    return
  }
  func.func @transform_0(%arg0: i32, %arg1: i32) -> (i32, i32, i32) {
    %c0_i32 = arith.constant 0 : i32
    %c0_i32_0 = arith.constant 0 : i32
    return %arg0, %arg1, %c0_i32 : i32, i32, i32
  }
  func.func @transform_1(%arg0: i32, %arg1: i32) -> (i32, i32, i32) {
    %c0_i32 = arith.constant 0 : i32
    %c0_i32_0 = arith.constant 0 : i32
    %c0_i32_1 = arith.constant 0 : i32
    return %arg0, %c0_i32, %c0_i32_0 : i32, i32, i32
  }
  func.func @transform_2(%arg0: i32, %arg1: i32) -> (i32, i32) {
    %c0_i32 = arith.constant 0 : i32
    %c0_i32_0 = arith.constant 0 : i32
    %c0_i32_1 = arith.constant 0 : i32
    return %c0_i32, %c0_i32_0 : i32, i32
  }
  func.func @transform_3(%arg0: i32, %arg1: i32) -> (i32, i32) {
    %c0_i32 = arith.constant 0 : i32
    %c0_i32_0 = arith.constant 0 : i32
    %c0_i32_1 = arith.constant 0 : i32
    return %c0_i32, %c0_i32_0 : i32, i32
  }
  func.func @transform_4(%arg0: i32, %arg1: i32) -> (i32, i32) {
    %c0_i32 = arith.constant 0 : i32
    %c0_i32_0 = arith.constant 0 : i32
    %c0_i32_1 = arith.constant 0 : i32
    return %c0_i32, %c0_i32_0 : i32, i32
  }
  func.func @transform_5(%arg0: i32, %arg1: i32) -> (i32, i32) {
    %c0_i32 = arith.constant 0 : i32
    %c0_i32_0 = arith.constant 0 : i32
    %c0_i32_1 = arith.constant 0 : i32
    return %c0_i32, %c0_i32_0 : i32, i32
  }
  func.func @transform_6(%arg0: i32, %arg1: i32) -> (i32, i32) {
    %c0_i32 = arith.constant 0 : i32
    %c0_i32_0 = arith.constant 0 : i32
    %c0_i32_1 = arith.constant 0 : i32
    return %c0_i32, %c0_i32_0 : i32, i32
  }
  func.func @transform_7(%arg0: i32, %arg1: i32) -> (i32, i32) {
    %c0_i32 = arith.constant 0 : i32
    %c0_i32_0 = arith.constant 0 : i32
    %c0_i32_1 = arith.constant 0 : i32
    return %c0_i32, %c0_i32_0 : i32, i32
  }
  func.func @transform_8(%arg0: i32, %arg1: i32) -> (i32, i32) {
    %c0_i32 = arith.constant 0 : i32
    %c0_i32_0 = arith.constant 0 : i32
    %c0_i32_1 = arith.constant 0 : i32
    return %c0_i32, %c0_i32_0 : i32, i32
  }
  func.func @transform_9(%arg0: i32, %arg1: i32) -> (i32, i32) {
    %c0_i32 = arith.constant 0 : i32
    %c0_i32_0 = arith.constant 0 : i32
    %c0_i32_1 = arith.constant 0 : i32
    return %c0_i32, %c0_i32_0 : i32, i32
  }
  func.func @transform_10(%arg0: i32, %arg1: i32) -> (i32, i32) {
    %c0_i32 = arith.constant 0 : i32
    %c0_i32_0 = arith.constant 0 : i32
    %c0_i32_1 = arith.constant 0 : i32
    return %c0_i32, %c0_i32_0 : i32, i32
  }
  func.func @transform_11(%arg0: i32, %arg1: i32) -> (i32, i32) {
    %c0_i32 = arith.constant 0 : i32
    %c0_i32_0 = arith.constant 0 : i32
    %c0_i32_1 = arith.constant 0 : i32
    return %c0_i32, %c0_i32_0 : i32, i32
  }
  func.func @transform_12(%arg0: i32, %arg1: i32) -> (i32, i32) {
    %c0_i32 = arith.constant 0 : i32
    %c0_i32_0 = arith.constant 0 : i32
    %c0_i32_1 = arith.constant 0 : i32
    return %c0_i32, %c0_i32_0 : i32, i32
  }
  func.func @transform_13(%arg0: i32, %arg1: i32) -> (i32, i32) {
    %c0_i32 = arith.constant 0 : i32
    %c0_i32_0 = arith.constant 0 : i32
    %c0_i32_1 = arith.constant 0 : i32
    return %c0_i32, %c0_i32_0 : i32, i32
  }
  func.func @transform_14(%arg0: i32, %arg1: i32) -> (i32, i32, i32) {
    %c0_i32 = arith.constant 0 : i32
    %c0_i32_0 = arith.constant 0 : i32
    return %arg0, %arg1, %c0_i32 : i32, i32, i32
  }
}

</mosaic_0001>

<bundles_post_ra>
// kernel: tpu_custom_call.1
= control target key start
LH: loop header
LB: loop body
LE: loop exit
PB: predicated region body
PF: predicated region fallthrough
CT: control target
= control target key end

     0   :  { %19 = vsyncpa [#allocation7], 0  ;;  %s1912_s0 = inlined_call_operand.vmem [shape: f32[2,8,32], index: 0, kind: input, shape index: {}]   ;;  %s1913_s1 = inlined_call_operand.vmem [shape: bf16[2,8,32], index: 1, kind: input, shape index: {}]   ;;  %s1914_s2 = inlined_call_operand.vmem [shape: bf16[32,32], index: 2, kind: input, shape index: {}]   ;;  %s1915_s3 = inlined_call_operand.vmem [shape: f32[1,32], index: 3, kind: input, shape index: {}]   ;;  %s1916_s4 = inlined_call_operand.vmem [shape: bf16[32,64], index: 4, kind: input, shape index: {}]   ;;  %s1917_s5 = inlined_call_operand.vmem [shape: f32[1,64], index: 5, kind: input, shape index: {}]   ;;  %s1918_s6 = inlined_call_operand.vmem [shape: f32[1,32], index: 6, kind: input, shape index: {}]   ;;  %s1919_s7 = inlined_call_operand.vmem [shape: f32[1,32], index: 7, kind: input, shape index: {}]   ;;  %s1920_s8 = inlined_call_operand.vmem [shape: bf16[128,32], index: 8, kind: input, shape index: {}]   ;;  %s1921_s9 = inlined_call_operand.vmem [shape: f32[1,128], index: 9, kind: input, shape index: {}]   ;;  %s1922_s10 = inlined_call_operand.vmem [shape: bf16[128,32], index: 10, kind: input, shape index: {}]   ;;  %s1923_s11 = inlined_call_operand.vmem [shape: f32[1,32], index: 11, kind: input, shape index: {}]   ;;  %s1924_s12 = inlined_call_operand.vmem [shape: f32[1,32], index: 12, kind: input, shape index: {}]   ;;  %s1925_s13 = inlined_call_operand.vmem [shape: f32[1,32], index: 13, kind: input, shape index: {}]   ;;  %s1926_s14 = inlined_call_operand.hbm [shape: f32[2,8,32], index: 14, kind: output, shape index: {}]  }
   0x1   :  { %21 = vsyncpa [#allocation7 + $0x1], 0  ;;  %s1654_s29 = smov 0   ;;  %s1656_s30 = smov 0  }
   0x2   :  { %s1658_s15 = smov 0   ;;  %s1660_s16 = smov 0  }
   0x3   :  { %s1662_s17 = smov 0   ;;  %s1664_s18 = smov 0  }
   0x4 LB: > { %1934 = sst [smem:[#allocation9_spill]] %s1546_s29  ;;  %s1261_s19 = sadd.s32 4294967295, %s1566_s18   ;;  %s1566_s18 = sphi %s1664_s18, %s27_s18   ;;  %s1562_s17 = sphi %s1662_s17, %s1949_s17   ;;  %s1558_s16 = sphi %s1660_s16, %s1948_s16   ;;  %s1554_s15 = sphi %s1658_s15, %s1947_s15   ;;  %s1550_s30 = sphi %s1656_s30, %s1951_s30   ;;  %s1546_s29 = sphi %s1654_s29, %s1950_s29  }
   0x5   : > { %1935 = sst [smem:[#allocation10_spill]] %s1554_s15  ;;  %s1262_s20 = sadd.s32 4294967294, %s1566_s18  }
   0x6   : > { %1936 = sst [smem:[#allocation11_spill]] %s1562_s17  ;;  %s39_s21 = sadd.s32 1, %s1562_s17 }
   0x7   : > { %1937 = sst [smem:[#allocation12_spill]] %s1566_s18  ;;  %s354_s22 = sadd.s32 1, %s1554_s15 }
   0x8   : > { %p41_p0 = scmp.ge.s32.totalorder %s39_s21, 2  ;;  %p364_p1 = scmp.ne.s32.totalorder %s1554_s15, %s1550_s30 }
   0x9   : > { %p365_p2 = scmp.eq.s32.totalorder %s1261_s19, 1  ;;  %p370_p3 = scmp.ne.s32.totalorder %s1550_s30, %s1546_s29 }
   0xa   : > { %s1953_s21 = smov (%p41_p0, %s39_s21), 0  ;;  %p371_p5 = scmp.eq.s32.totalorder %s1262_s20, 1 }
   0xb   : > { %1938 = sst [smem:[#allocation13_spill]] %s1953_s21  ;;  %p1694_p4 = por %p365_p2, %p364_p1 }
   0xc   : > { %s349_s24 = ssub.s32 %s1562_s17, %s1953_s21  ;;  %p1265_p6 = scmp.ge.s32.totalorder %s1566_s18, 1 }
   0xd   : > { %p352_p7 = scmp.eq.s32.totalorder %s349_s24, 0  ;;  %p1701_p8 = por %p371_p5, %p370_p3 }
   0xe   : > { %p442_p9 = scmp.lt.s32.totalorder %s1566_s18, 3 }
   0xf   : > { %s1940_s25 = scalar_select %p1701_p8, 1, 0 }
  0x10   : > { %s1707_s26 = scalar_select %p352_p7, %s1554_s15, %s354_s22  }
  0x11   : > { %1941 = sst [smem:[#allocation14_spill]] %s1940_s25  ;;  %p443_p10 = pnand %p1265_p6, %p442_p9 }
  0x12   : > { %1942 = sst [smem:[#allocation15_spill]] %s1707_s26  ;;  %p494_p11 = scmp.lt.s32.totalorder (!%p443_p10), %s1558_s16, 1 }
  0x13   : > { %446 = sbr.rel (%p443_p10) target bundleno = 1650 (0x672), region = 76  ;;  %s1570_s26 = smov (!%p443_p10), 104  }
  0x14   : > { %s1571_s24 = smov (!%p443_p10), 96   ;;  %s1575_s19 = smov (!%p443_p10), 8  }
  0x15   : > { %s1576_s20 = smov (!%p443_p10), 24   ;;  %s1577_s17 = smov (!%p443_p10), 16  }
  0x16   : > { %s491_s21 = sand.u32 (!%p443_p10), 1, %s1550_s30  }
  0x17   : > { %s1266_s25 = sshll.u32 (!%p443_p10), %s491_s21, 3  ;;  %s1162_s15 = scalar_lea.sflag (!%p443_p10), [#allocation7], %s491_s21 }
  0x18   : > { %v1365_v0 = vld [vmem:[%s1916_s4 + $0x8] sm:$0xff]  ;;  %v1364_v2 = vld [vmem:[%s1916_s4] sm:$0xff]  ;;  %s495_s22 = scalar_select %p494_p11, %s1558_s16, 1  ;;  %vm531_vm0 = vcmask 261120   ;;  %vm549_vm1 = vcmask 60416   ;;  %vm657_vm2 = vcmask 64512  }
  0x19   : > { %v1367_v1 = vld [vmem:[%s1914_s2 + $0x8] sm:$0xff]  ;;  %541 = vmatpush.bf16.msra.mxu0 %v1365_v0  ;;  %v1366_v3 = vld [vmem:[%s1914_s2] sm:$0xff]  ;;  %vm797_vm3 = vcmask 1043456   ;;  %vm888_vm4 = vcmask 130112   ;;  %vm894_vm5 = vcmask 195712   ;;  %vm900_vm6 = vcmask 261312  }
  0x1a   : > { %618 = vmatpush.bf16.msra.mxu1 %v1367_v1  ;;  %s1268_s27 = sshll.u32 %s495_s22, 2  ;;  %s1267_s28 = sshll.u32 %s495_s22, 3  ;;  %v1450_v7 = vld [vmem:[%s1917_s5] ss:$0 sm:$0xff] }
  0x1b   : > { %s504_s29 = scalar_lea.vmem %s1913_s1, %s1268_s27  ;;  %s500_s18 = scalar_lea.vmem %s1912_s0, %s1267_s28  ;;  %v1451_v8 = vld [vmem:[%s1915_s3] ss:$0 sm:$0xff] }
  0x1c   : > { %v510_v4 = vld [vmem:[%s504_s29] sm:$0xf]  ;;  %s1568_s29 = smov 112   ;;  %s1572_s22 = smov 88  }
  0x1d   : > { %542 = vmatpush.bf16.msra.mxu0 %v1364_v2  ;;  %v1729_v5 = vld [vmem:[%s500_s18] sm:$0xff]  ;;  %s1569_s18 = smov 120   ;;  %s1573_s27 = smov 80  }
  0x1e   : > { %619 = vmatpush.bf16.msra.mxu1 %v1366_v3  ;;  %v587_v6 = vpack.c.bf16 %v1729_v5, %v1729_v5  ;;  %s1574_s28 = smov 72  }
  0x20   : > { %1277 = vmatmul.msk.bf16.vlgmr.msra.gmra.mxu0 %vm531_vm0, %v510_v4 }
  0x21   : > { %1286 = vmatmul.msk.bf16.vlgmr.msra.gmra.mxu1 %vm531_vm0, %v587_v6 }
  0x9d   : > { %v544_v9 = vpop.f32.mrf.mxu0 }
  0x9e   : > { %v621_v10 = vpop.f32.mrf.mxu1  ;;  %v545_v11 = vadd.f32 %v1450_v7, %v544_v9 }
  0x9f   : > { %v622_v12 = vadd.f32 %v1451_v8, %v621_v10 }
  0xa0   : > { %v1741_v13 = vpack.c.bf16 %v545_v11, %v545_v11 }
  0xa1   : > { %v625_v14 = vmul.f32 0.35355338, %v622_v12 }
  0xa2   : > { %550 = vst.msk [vmem:[#allocation3] sm:$0xf] %vm549_vm1, %v1741_v13  ;;  %566 = vrot.lane.b32.xlu1 %v1741_v13, %s1568_s29  ;;  %556 = vrot.lane.b32.xlu0 %v1741_v13, %s1569_s18 }
  0xa3   : > { %v626_v15 = vpack.c.bf16 %v625_v14, %v625_v14 }
  0xa5   : > { %628 = vst.msk [vmem:[#allocation2] sm:$0xf] %vm549_vm1, %v626_v15  ;;  %635 = vrot.lane.b32.xlu2 %v626_v15, %s1568_s29  ;;  %v546_v16 = vpop.f32.mrf.mxu0  ;;  %s1361_s29 = sshll.u32 %s1558_s16, 3 }
  0xa6   : > { %v623_v17 = vpop.f32.mrf.mxu1 }
  0xa9   : > { %v649_v18 = vld [vmem:[#allocation3] sm:$0xf] }
  0xaa   : > { %576 = vrot.lane.b32.xlu1 %v1741_v13, %s1570_s26  ;;  %v662_v19 = vsel %vm657_vm2, %v649_v18, 0  ;;  %630 = vrot.lane.b32.xlu0 %v626_v15, %s1569_s18 }
  0xab   : > { %671 = vmatpush.bf16.xpose.msrb.mxu0 %v662_v19 }
  0xac   : > { %v645_v20 = vld [vmem:[#allocation2] sm:$0xf] }
  0xad   : > { %640 = vrot.lane.b32.xlu2 %v626_v15, %s1570_s26 }
  0xb2   : > { %552 = vrot.lane.b32.xlu1 %v1741_v13, %s1571_s24  ;;  %1287 = vmatmul.msk.bf16.vlgmr.msrb.gmra.mxu0 %vm657_vm2, %v645_v20 }
  0xba   : > { %561 = vrot.lane.b32.xlu1 %v1741_v13, %s1572_s22 }
  0xff   : > { %v636_v21 = vpop.permute.xlu2 %635 }
 0x100   : > { %639 = vst.msk [vmem:[#allocation2 + $0x8] sm:$0xf] %vm549_vm1, %v636_v21 }
 0x107   : > { %v641_v22 = vpop.permute.xlu2 %640  ;;  %v647_v32 = vld [vmem:[#allocation2 + $0x8] sm:$0xf] }
 0x108   : > { %644 = vst.msk [vmem:[#allocation2 + $0xc] sm:$0xf] %vm549_vm1, %v641_v22 }
 0x10f   : > { %v648_v37 = vld [vmem:[#allocation2 + $0xc] sm:$0xf] }
 0x114   : > { %v567_v23 = vpop.permute.xlu1 %566  ;;  %v557_v24 = vpop.permute.xlu0 %556 }
 0x115   : > { %570 = vst.msk [vmem:[#allocation3 + $0x8] sm:$0xf] %vm549_vm1, %v567_v23 }
 0x116   : > { %560 = vst.msk [vmem:[#allocation3 + $0x4] sm:$0xf] %vm549_vm1, %v557_v24 }
 0x11c   : > { %v577_v25 = vpop.permute.xlu1 %576  ;;  %v651_v26 = vld [vmem:[#allocation3 + $0x8] sm:$0xf]  ;;  %v631_v27 = vpop.permute.xlu0 %630 }
 0x11d   : > { %580 = vst.msk [vmem:[#allocation3 + $0xc] sm:$0xf] %vm549_vm1, %v577_v25  ;;  %v650_v28 = vld [vmem:[#allocation3 + $0x4] sm:$0xf]  ;;  %v700_v29 = vsel %vm657_vm2, %v651_v26, 0 }
 0x11e   : > { %v681_v30 = vsel %vm657_vm2, %v650_v28, 0  ;;  %709 = vmatpush.bf16.xpose.msra.mxu0 %v700_v29  ;;  %634 = vst.msk [vmem:[#allocation2 + $0x4] sm:$0xf] %vm549_vm1, %v631_v27 }
 0x11f   : > { %690 = vmatpush.bf16.xpose.msra.mxu3 %v681_v30 }
 0x124   : > { %v553_v31 = vpop.permute.xlu1 %552  ;;  %v652_v33 = vld [vmem:[#allocation3 + $0xc] sm:$0xf] }
 0x125   : > { %555 = vst.msk [vmem:[#allocation4] sm:$0xf] %vm549_vm1, %v553_v31  ;;  %1289 = vmatmul.msk.bf16.vlgmr.msra.gmra.mxu0 %vm657_vm2, %v647_v32  ;;  %v719_v34 = vsel %vm657_vm2, %v652_v33, 0  ;;  %v646_v35 = vld [vmem:[#allocation2 + $0x4] sm:$0xf] }
 0x126   : > { %728 = vmatpush.bf16.xpose.msrb.mxu1 %v719_v34  ;;  %1288 = vmatmul.msk.bf16.vlgmr.msra.gmra.mxu3 %vm657_vm2, %v646_v35 }
 0x12c   : > { %v562_v36 = vpop.permute.xlu1 %561  ;;  %v653_v38 = vld [vmem:[#allocation4] sm:$0xf] }
 0x12d   : > { %565 = vst.msk [vmem:[#allocation4 + $0x4] sm:$0xf] %vm549_vm1, %v562_v36  ;;  %1290 = vmatmul.msk.bf16.vlgmr.msrb.gmra.mxu1 %vm657_vm2, %v648_v37  ;;  %v799_v39 = vsel %vm797_vm3, %v653_v38, 0 }
 0x12e   : > { %808 = vmatpush.bf16.msra.mxu1 %v799_v39 }
 0x12f   : > { %v673_v40 = vpop.f32.mrf.mxu0 }
 0x130   : > { %v734_v41 = vsel %vm657_vm2, %v673_v40, -inf }
 0x131   : > { %735 = vmax.xlane.f32.xlu0 %v734_v41 }
 0x134   : > { %v654_v42 = vld [vmem:[#allocation4 + $0x4] sm:$0xf] }
 0x135   : > { %v818_v43 = vsel %vm797_vm3, %v654_v42, 0 }
 0x136   : > { %827 = vmatpush.bf16.msrb.mxu3 %v818_v43 }
 0x137   : > { %v675_v44 = vpop.f32.mrf.mxu0 }
 0x145   : > { %571 = vrot.lane.b32.xlu0 %v1741_v13, %s1573_s27  ;;  %s1173_s27 = scalar_lea.hbm %s1926_s14, %s1361_s29 }
 0x1a2   : > { %v711_v45 = vpop.f32.mrf.mxu0 }
 0x1a3   : > { %v740_v46 = vsel %vm657_vm2, %v711_v45, -inf }
 0x1a4   : > { %v736_v47 = vpop.xlane.xlu0 %735  ;;  %741 = vmax.xlane.f32.xlu1 %v740_v46 }
 0x1a5   : > { %v758_v48 = vsub.f32 %v673_v40, %v736_v47  ;;  %v746_v23 = vsub.f32 -inf, %v736_v47 }
 0x1a7   : > { %v762_v49 = vmul.f32 1.442695, %v758_v48  ;;  %v750_v24 = vmul.f32 1.442695, %v746_v23 }
 0x1a9   : > { %v692_v50 = vpop.f32.mrf.mxu3  ;;  %1458 = vpow2.f32 %v762_v49 }
 0x1aa   : > { %v713_v51 = vpop.f32.mrf.mxu0  ;;  %v730_v52 = vpop.f32.mrf.mxu1  ;;  %v737_v56 = vsel %vm657_vm2, %v692_v50, -inf }
 0x1ab   : > { %v743_v53 = vsel %vm657_vm2, %v730_v52, -inf }
 0x1ac   : > { %744 = vmax.xlane.f32.xlu2 %v743_v53 }
 0x1af   : > { %v1459_v54 = vpop.eup %1458 }
 0x1b0   : > { %v790_v55 = vpack.c.bf16 %v1459_v54, %v1459_v54  ;;  %v774_v62 = vsel %vm657_vm2, %v1459_v54, 0.0 }
 0x1b1   : > { %v694_v57 = vpop.f32.mrf.mxu3 }
 0x1b2   : > { %v732_v58 = vpop.f32.mrf.mxu1  ;;  %1291 = vmatmul.msk.bf16.vlgmr.msra.gmra.mxu1 %vm657_vm2, %v790_v55 }
 0x1b4   : > { %738 = vmax.xlane.f32.xlu2 %v737_v56 }
 0x1b7   : > { %v572_v59 = vpop.permute.xlu0 %571 }
 0x1b8   : > { %575 = vst.msk [vmem:[#allocation4 + $0x8] sm:$0xf] %vm549_vm1, %v572_v59 }
 0x1bf   : > { %v655_v60 = vld [vmem:[#allocation4 + $0x8] sm:$0xf] }
 0x1c0   : > { %v837_v61 = vsel %vm797_vm3, %v655_v60, 0 }
 0x1c1   : > { %846 = vmatpush.bf16.msrb.mxu0 %v837_v61 }
 0x1cc   : > { %581 = vrot.lane.b32.xlu2 %v1741_v13, %s1574_s28 }
 0x1f5   : > { %775 = vadd.xlane.f32.xlu2 %v774_v62 }
 0x217   : > { %v742_v63 = vpop.xlane.xlu1 %741 }
 0x218   : > { %v760_v0 = vsub.f32 %v711_v45, %v742_v63  ;;  %v748_v37 = vsub.f32 -inf, %v742_v63 }
 0x21a   : > { %v766_v1 = vmul.f32 1.442695, %v760_v0  ;;  %v754_v39 = vmul.f32 1.442695, %v748_v37 }
 0x21c   : > { %1460 = vpow2.f32 %v766_v1 }
 0x21f   : > { %v745_v2 = vpop.xlane.xlu2 %744 }
 0x220   : > { %v761_v9 = vsub.f32 %v730_v52, %v745_v2  ;;  %v749_v33 = vsub.f32 -inf, %v745_v2 }
 0x222   : > { %v1461_v3 = vpop.eup %1460  ;;  %v768_v11 = vmul.f32 1.442695, %v761_v9  ;;  %v756_v35 = vmul.f32 1.442695, %v749_v33  ;;  %v1375_v9 = vld [vmem:[%s1920_s8 + $0x38] sm:$0xff]  ;;  %v1368_v33 = vld [vmem:[%s1920_s8] sm:$0xff] }
 0x223   : > { %v792_v4 = vpack.c.bf16 %v1461_v3, %v1461_v3  ;;  %v780_v6 = vsel %vm657_vm2, %v1461_v3, 0.0 }
 0x224   : > { %781 = vadd.xlane.f32.xlu0 %v780_v6 }
 0x225   : > { %1293 = vmatmul.msk.bf16.vlgmr.msrb.gmra.mxu0 %vm657_vm2, %v792_v4 }
 0x227   : > { %v739_v7 = vpop.xlane.xlu2 %738 }
 0x228   : > { %v759_v8 = vsub.f32 %v692_v50, %v739_v7  ;;  %v747_v32 = vsub.f32 -inf, %v739_v7 }
 0x22a   : > { %v764_v10 = vmul.f32 1.442695, %v759_v8  ;;  %v752_v34 = vmul.f32 1.442695, %v747_v32  ;;  %v1578_v8 = vmov 32.0  }
 0x22c   : > { %1462 = vpow2.f32 %v764_v10  ;;  %v1029_v10 = vsel %vm531_vm0, %v1375_v9, 0 }
 0x22d   : > { %1464 = vpow2.f32 %v768_v11  ;;  %1031 = vmatpush.bf16.xpose.msra.mxu2 %v1029_v10 }
 0x22e   : > { %1466 = vpow2.f32 %v750_v24 }
 0x22f   : > { %v582_v12 = vpop.permute.xlu2 %581  ;;  %v810_v13 = vpop.f32.mrf.mxu1 }
 0x230   : > { %585 = vst.msk [vmem:[#allocation4 + $0xc] sm:$0xf] %vm549_vm1, %v582_v12  ;;  %v1374_v12 = vld [vmem:[%s1920_s8 + $0x30] sm:$0xff] }
 0x232   : > { %v1463_v14 = vpop.eup %1462 }
 0x233   : > { %v777_v15 = vsel %vm657_vm2, %v1463_v14, 0.0  ;;  %v791_v16 = vpack.c.bf16 %v1463_v14, %v1463_v14  ;;  %v1465_v17 = vpop.eup %1464 }
 0x234   : > { %778 = vadd.xlane.f32.xlu1 %v777_v15  ;;  %v793_v21 = vpack.c.bf16 %v1465_v17, %v1465_v17  ;;  %v783_v22 = vsel %vm657_vm2, %v1465_v17, 0.0  ;;  %v1467_v25 = vpop.eup %1466  ;;  %v1373_v15 = vld [vmem:[%s1920_s8 + $0x28] sm:$0xff] }
 0x235   : > { %1292 = vmatmul.msk.bf16.vlgmr.msrb.gmra.mxu3 %vm657_vm2, %v791_v16  ;;  %v770_v26 = vmul.f32 0.0, %v1467_v25  ;;  %v1023_v17 = vsel %vm531_vm0, %v1373_v15, 0  ;;  %v1371_v25 = vld [vmem:[%s1920_s8 + $0x18] sm:$0xff] }
 0x237   : > { %v656_v18 = vld [vmem:[#allocation4 + $0xc] sm:$0xf]  ;;  %v812_v19 = vpop.f32.mrf.mxu1  ;;  %v871_v29 = vadd.f32 %v810_v13, %v770_v26 }
 0x238   : > { %v856_v20 = vsel %vm797_vm3, %v656_v18, 0  ;;  %v1372_v19 = vld [vmem:[%s1920_s8 + $0x20] sm:$0xff] }
 0x239   : > { %865 = vmatpush.bf16.msrb.mxu1 %v856_v20 }
 0x23c   : > { %1294 = vmatmul.msk.bf16.vlgmr.msrb.gmra.mxu1 %vm657_vm2, %v793_v21  ;;  %784 = vadd.xlane.f32.xlu1 %v783_v22  ;;  %v1020_v22 = vsel %vm531_vm0, %v1372_v19, 0 }
 0x268   : > { %v776_v27 = vpop.xlane.xlu2 %775 }
 0x269   : > { %v786_v28 = vadd.f32 %v776_v27, %v770_v26 }
 0x26b   : > { %1468 = vrcp.f32 %v786_v28  ;;  %v1017_v28 = vsel %vm531_vm0, %v1371_v25, 0 }
 0x26c   : > { %1470 = vpow2.f32 %v752_v34  ;;  %v1008_v34 = vsel %vm531_vm0, %v1368_v33, 0 }
 0x26d   : > { %1472 = vpow2.f32 %v756_v35  ;;  %v1383_v35 = vld [vmem:[%s1922_s10 + $0x38] sm:$0xff] }
 0x26e   : > { %1474 = vpow2.f32 %v754_v39  ;;  %1114 = vmatpush.bf16.msra.mxu3 %v1383_v35 }
 0x271   : > { %v1469_v30 = vpop.eup %1468 }
 0x272   : > { %v879_v31 = vmul.f32 %v1469_v30, %v871_v29  ;;  %v1471_v40 = vpop.eup %1470  ;;  %v1370_v29 = vld [vmem:[%s1920_s8 + $0x10] sm:$0xff] }
 0x273   : > { %v1473_v42 = vpop.eup %1472  ;;  %v771_v43 = vmul.f32 0.0, %v1471_v40  ;;  %v1014_v30 = vsel %vm531_vm0, %v1370_v29, 0  ;;  %v1381_v40 = vld [vmem:[%s1922_s10 + $0x28] sm:$0xff] }
 0x274   : > { %883 = vst.msk [vmem:[#allocation5] sm:$0xff] %vm657_vm2, %v879_v31  ;;  %v773_v44 = vmul.f32 0.0, %v1473_v42  ;;  %v1475_v48 = vpop.eup %1474  ;;  %v1369_v31 = vld [vmem:[%s1920_s8 + $0x8] sm:$0xff] }
 0x275   : > { %v772_v50 = vmul.f32 0.0, %v1475_v48  ;;  %v1011_v32 = vsel %vm531_vm0, %v1369_v31, 0 }
 0x297   : > { %v782_v49 = vpop.xlane.xlu0 %781 }
 0x298   : > { %v788_v51 = vadd.f32 %v782_v49, %v772_v50 }
 0x2a2   : > { %v848_v36 = vpop.f32.mrf.mxu0 }
 0x2a3   : > { %v873_v60 = vadd.f32 %v848_v36, %v772_v50  ;;  %v1452_v50 = vld [vmem:[%s1918_s6] ss:$0 sm:$0xff] }
 0x2a7   : > { %v779_v38 = vpop.xlane.xlu1 %778 }
 0x2a8   : > { %v787_v45 = vadd.f32 %v779_v38, %v771_v43  ;;  %v1382_v38 = vld [vmem:[%s1922_s10 + $0x30] sm:$0xff] }
 0x2a9   : > { %1115 = vmatpush.bf16.msra.mxu3 %v1382_v38 }
 0x2aa   : > { %v850_v41 = vpop.f32.mrf.mxu0  ;;  %1476 = vrcp.f32 %v787_v45 }
 0x2ab   : > { %v1380_v41 = vld [vmem:[%s1922_s10 + $0x20] sm:$0xff] }
 0x2ad   : > { %1116 = vmatpush.bf16.msra.mxu3 %v1381_v40 }
 0x2af   : > { %v785_v46 = vpop.xlane.xlu1 %784 }
 0x2b0   : > { %v789_v47 = vadd.f32 %v785_v46, %v773_v44  ;;  %v1477_v54 = vpop.eup %1476 }
 0x2b1   : > { %1117 = vmatpush.bf16.msra.mxu3 %v1380_v41 }
 0x2b2   : > { %1478 = vrcp.f32 %v789_v47  ;;  %v1378_v47 = vld [vmem:[%s1922_s10 + $0x10] sm:$0xff] }
 0x2b3   : > { %1480 = vrcp.f32 %v788_v51 }
 0x2b4   : > { %1482 = vrcp.f32 %v1578_v8 }
 0x2b8   : > { %v829_v52 = vpop.f32.mrf.mxu3  ;;  %v1479_v57 = vpop.eup %1478 }
 0x2b9   : > { %v867_v53 = vpop.f32.mrf.mxu1  ;;  %v872_v55 = vadd.f32 %v829_v52, %v771_v43  ;;  %v1481_v63 = vpop.eup %1480 }
 0x2ba   : > { %v874_v56 = vadd.f32 %v867_v53, %v773_v44  ;;  %v881_v0 = vmul.f32 %v1481_v63, %v873_v60  ;;  %v1483_v11 = vpop.eup %1482  ;;  %v1379_v44 = vld [vmem:[%s1922_s10 + $0x18] sm:$0xff]  ;;  %v1453_v53 = vld [vmem:[%s1919_s7] ss:$0 sm:$0xff] }
 0x2bb   : > { %v880_v58 = vmul.f32 %v1477_v54, %v872_v55  ;;  %v910_v13 = vmul.f32 32.0, %v1483_v11  ;;  %vm914_vm7 = vweird.f32 %v1483_v11  ;;  %1118 = vmatpush.bf16.msra.mxu3 %v1379_v44 }
 0x2bc   : > { %v882_v59 = vmul.f32 %v1479_v57, %v874_v56  ;;  %v1377_v57 = vld [vmem:[%s1922_s10 + $0x8] sm:$0xff] }
 0x2bd   : > { %885 = vrot.lane.b32.xlu1 %v880_v58, %s1575_s19  ;;  %v911_v14 = vsub.f32 1.0, %v910_v13  ;;  %v1376_v58 = vld [vmem:[%s1922_s10] sm:$0xff] }
 0x2be   : > { %897 = vrot.lane.b32.xlu0 %v882_v59, %s1576_s20  ;;  %v1454_v59 = vld [vmem:[%s1921_s9] ss:$0 sm:$0xff]  ;;  %s493_s20 = scalar_lea.vmem [#allocation6], %s1266_s25  ;;  %s1508_s25 = scalar_lea.hbm %s1926_s14, 16 }
 0x2bf   : > { %v912_v16 = vmul.f32 %v1483_v11, %v911_v14  ;;  %1119 = vmatpush.bf16.msra.mxu3 %v1378_v47  ;;  %s1175_s16 = sshll.u32 %s493_s20, 4  ;;  %s1176_s16 = int_to_ptr.vmem [resolvable:$true] %s1175_s16 }
 0x2c0   : > { %v831_v61 = vpop.f32.mrf.mxu3 }
 0x2c1   : > { %v869_v62 = vpop.f32.mrf.mxu1  ;;  %v913_v18 = vadd.f32 %v1483_v11, %v912_v16 }
 0x2c3   : > { %v1805_v20 = vsel %vm914_vm7, %v1483_v11, %v913_v18  ;;  %1120 = vmatpush.bf16.msra.mxu3 %v1377_v57 }
 0x2c5   : > { %891 = vrot.lane.b32.xlu1 %v881_v0, %s1577_s17  ;;  %s1177_s17 = sshll.u32 %s1173_s27, 4  ;;  %s1178_s17 = int_to_ptr.hbm [resolvable:$true] %s1177_s17 }
 0x2c6   : > { %s1502_s18 = sshra.s32 %s1178_s17, 4  ;;  %s1503_s18 = int_to_ptr.hbm [resolvable:$true] %s1502_s18 }
 0x2c7   : > { %1121 = vmatpush.bf16.msra.mxu3 %v1376_v58  ;;  %s1504_s29 = scalar_lea.hbm %s1503_s18, 8  ;;  %p1509_p1 = scmp.lt.s32.totalorder %s1503_s18, %s1926_s14 }
 0x2c8   : > { %p1505_p12 = scmp.ne.s32.totalorder %s1503_s18, %s1504_s29  ;;  %p1510_p2 = scmp.lt.s32.totalorder %s1508_s25, %s1504_s29 }
 0x2ca   : > { %p1506_p13 = pnand %p1505_p12, %p1694_p4  ;;  %p1511_p3 = por %p1510_p2, %p1509_p1 }
 0x2cc   : > { %p1507_p0 = pneg %p1506_p13 }
 0x2ce   : > { %p1512_p5 = pnand %p1511_p3, %p1507_p0 }
 0x32f   : > { %v886_v1 = vpop.permute.xlu1 %885 }
 0x330   : > { %889 = vst.msk [vmem:[#allocation5] sm:$0xff] %vm888_vm4, %v886_v1  ;;  %v898_v3 = vpop.permute.xlu0 %897  ;;  %v1455_v1 = vld [vmem:[%s1923_s11] ss:$0 sm:$0xff] }
 0x337   : > { %v892_v2 = vpop.permute.xlu1 %891 }
 0x338   : > { %895 = vst.msk [vmem:[#allocation5] sm:$0xff] %vm894_vm5, %v892_v2 }
 0x339   : > { %901 = vst.msk [vmem:[#allocation5] sm:$0xff] %vm900_vm6, %v898_v3 }
 0x340   : > { %v902_v4 = vld [vmem:[#allocation5] sm:$0xff] }
 0x341   : > { %v903_v6 = vadd.f32 %v902_v4, %v1729_v5  ;;  %v1026_v5 = vsel %vm531_vm0, %v1374_v12, 0 }
 0x342   : > { %1032 = vmatpush.bf16.xpose.msra.mxu2 %v1026_v5 }
 0x343   : > { %v906_v7 = vsel %vm531_vm0, %v903_v6, 0.0 }
 0x344   : > { %907 = vadd.xlane.f32.xlu1 %v906_v7 }
 0x34a   : > { %1033 = vmatpush.bf16.xpose.msra.mxu2 %v1023_v17 }
 0x352   : > { %1034 = vmatpush.bf16.xpose.msra.mxu2 %v1020_v22  ;;  %v1456_v22 = vld [vmem:[%s1924_s12] ss:$0 sm:$0xff] }
 0x35a   : > { %1035 = vmatpush.bf16.xpose.msra.mxu2 %v1017_v28 }
 0x362   : > { %1036 = vmatpush.bf16.xpose.msra.mxu2 %v1014_v30 }
 0x36a   : > { %1037 = vmatpush.bf16.xpose.msra.mxu2 %v1011_v32 }
 0x372   : > { %1038 = vmatpush.bf16.xpose.msra.mxu2 %v1008_v34 }
 0x3b7   : > { %v908_v21 = vpop.xlane.xlu1 %907 }
 0x3b8   : > { %v916_v23 = vmul.f32 %v1805_v20, %v908_v21 }
 0x3ba   : > { %v917_v24 = vsub.f32 %v903_v6, %v916_v23 }
 0x3bc   : > { %v918_v26 = vmul.f32 %v917_v24, %v917_v24 }
 0x3be   : > { %v919_v27 = vsel %vm531_vm0, %v918_v26, 0.0 }
 0x3bf   : > { %920 = vadd.xlane.f32.xlu2 %v919_v27 }
 0x432   : > { %v921_v36 = vpop.xlane.xlu2 %920 }
 0x433   : > { %v922_v37 = vmul.f32 %v921_v36, %v1805_v20 }
 0x435   : > { %v923_v39 = vadd.f32 1e-05, %v922_v37 }
 0x437   : > { %1484 = vrsqrt.f32 %v923_v39  ;;  %vm930_vm9 = vweird.f32 %v923_v39 }
 0x43d   : > { %v1485_v42 = vpop.eup %1484 }
 0x43e   : > { %v925_v43 = vmul.f32 %v1485_v42, %v923_v39  ;;  %vm931_vm8 = vweird.f32 %v1485_v42 }
 0x43f   : > { %vm932_vm10 = vmor %vm930_vm9, %vm931_vm8 }
 0x440   : > { %v926_v45 = vmul.f32 %v1485_v42, %v925_v43 }
 0x442   : > { %v927_v46 = vmul.f32 0.5, %v926_v45 }
 0x444   : > { %v928_v48 = vsub.f32 1.5, %v927_v46 }
 0x446   : > { %v929_v49 = vmul.f32 %v1485_v42, %v928_v48 }
 0x448   : > { %v933_v51 = vsel %vm932_vm10, %v1485_v42, %v929_v49 }
 0x449   : > { %v934_v52 = vmul.f32 %v933_v51, %v917_v24  ;;  %v1457_v24 = vld [vmem:[%s1925_s13] ss:$0 sm:$0xff] }
 0x44b   : > { %v938_v54 = vmul.f32 %v1452_v50, %v934_v52 }
 0x44d   : > { %v942_v55 = vadd.f32 %v1453_v53, %v938_v54 }
 0x44f   : > { %v943_v56 = vpack.c.bf16 %v942_v55, %v942_v55 }
 0x451   : > { %1327 = vmatmul.msk.bf16.vlgmr.msra.gmra.mxu2 %vm531_vm0, %v943_v56 }
 0x4d4   : > { %v1040_v60 = vpop.f32.mrf.mxu2 }
 0x4d5   : > { %v1041_v61 = vadd.f32 %v1454_v59, %v1040_v60 }
 0x4d7   : > { %v1044_v62 = vmax.f32 %v1041_v61, 0.0 }
 0x4d9   : > { %v1061_v63 = vpack.c.bf16 %v1044_v62, %v1044_v62 }
 0x4db   : > { %1122 = vmatmul.bf16.vlgmr.msra.gmra.mxu3 %v1061_v63 }
 0x4dc   : > { %v1042_v0 = vpop.f32.mrf.mxu2 }
 0x55e   : > { %v1123_v2 = vpop.f32.mrf.mxu3 }
 0x55f   : > { %v1124_v3 = vadd.f32 %v1455_v1, %v1123_v2 }
 0x561   : > { %v1127_v4 = vadd.f32 %v1124_v3, %v942_v55 }
 0x563   : > { %v1130_v6 = vsel %vm531_vm0, %v1127_v4, 0.0 }
 0x564   : > { %1131 = vadd.xlane.f32.xlu2 %v1130_v6 }
 0x566   : > { %v1125_v7 = vpop.f32.mrf.mxu3 }
 0x5d7   : > { %v1132_v8 = vpop.xlane.xlu2 %1131 }
 0x5d8   : > { %v1133_v9 = vmul.f32 %v1132_v8, %v1805_v20 }
 0x5da   : > { %v1134_v10 = vsub.f32 %v1127_v4, %v1133_v9 }
 0x5dc   : > { %v1135_v11 = vmul.f32 %v1134_v10, %v1134_v10 }
 0x5de   : > { %v1136_v12 = vsel %vm531_vm0, %v1135_v11, 0.0 }
 0x5df   : > { %1137 = vadd.xlane.f32.xlu0 %v1136_v12 }
 0x652   : > { %v1138_v13 = vpop.xlane.xlu0 %1137 }
 0x653   : > { %v1139_v5 = vmul.f32 %v1138_v13, %v1805_v20 }
 0x655   : > { %v1140_v14 = vadd.f32 1e-05, %v1139_v5 }
 0x657   : > { %1486 = vrsqrt.f32 %v1140_v14  ;;  %vm1147_vm12 = vweird.f32 %v1140_v14 }
 0x65d   : > { %v1487_v15 = vpop.eup %1486 }
 0x65e   : > { %v1142_v16 = vmul.f32 %v1487_v15, %v1140_v14  ;;  %vm1148_vm11 = vweird.f32 %v1487_v15 }
 0x65f   : > { %vm1149_vm13 = vmor %vm1147_vm12, %vm1148_vm11 }
 0x660   : > { %v1143_v17 = vmul.f32 %v1487_v15, %v1142_v16 }
 0x662   : > { %v1144_v18 = vmul.f32 0.5, %v1143_v17 }
 0x664   : > { %v1145_v19 = vsub.f32 1.5, %v1144_v18 }
 0x666   : > { %v1146_v21 = vmul.f32 %v1487_v15, %v1145_v19 }
 0x668   : > { %v1150_v20 = vsel %vm1149_vm13, %v1487_v15, %v1146_v21 }
 0x669   : > { %v1151_v23 = vmul.f32 %v1150_v20, %v1134_v10 }
 0x66b   : > { %v1155_v25 = vmul.f32 %v1456_v22, %v1151_v23 }
 0x66d   : > { %v1159_v26 = vadd.f32 %v1457_v24, %v1155_v25 }
 0x66f   : > { %1160 = vst.msk [vmem:[%s493_s20] sm:$0xff] %vm531_vm0, %v1159_v26 }
 0x670   : > { %1515 = shalt.err (!%p1512_p5)
}
 0x671   : > { %1384 = dma.vmem_to_hbm [thread:$0]  (%p1694_p4), %s1176_s16, 128, %s1178_s17, %s1162_s15  }
 0x672 PF: > { %s1943_s21 = sld [smem:[#allocation12_spill]] }
 0x673   : > { %s1944_s28 = sld [smem:[#allocation9_spill]] }
 0x678   : > { %p1390_p6 = scmp.ge.s32.totalorder %s1943_s21, 2 }
 0x679   : > { %s1189_s20 = sand.u32 1, %s1944_s28  }
 0x67a   : > { %p1387_p7 = pnand %p1390_p6, %p1701_p8  ;;  %s1190_s26 = scalar_lea.sflag [#allocation7], %s1189_s20 }
 0x67c   : > { %p1388_p9 = pneg %p1387_p7 }
 0x67e   : > { %1541 = dma.done.wait (%p1388_p9), %s1190_s26, 128  }
 0x67f   : > { %1543 = vsyncadd (%p1388_p9), %s1190_s26, 4294967168  ;;  %s27_s18 = sadd.s32 1, %s1943_s21   ;;  %s1946_s24 = sld [smem:[#allocation10_spill]] }
 0x680   : > { %p24_p10 = scmp.ge.s32.totalorder %s27_s18, 4   ;;  %s1947_s15 = sld [smem:[#allocation15_spill]] }
 0x681   : > { %s1948_s16 = sld [smem:[#allocation11_spill]]  ;;  %s1950_s29 = smov %s1550_s30 }
 0x682   : > { %s1949_s17 = sld [smem:[#allocation13_spill]]  ;;  %26 = sbr.rel (!%p24_p10) target bundleno = 4 (0x4), region = 127 }
 0x685   : > { %s1951_s30 = smov %s1946_s24 }
 0x687   :  { %1196 = vsyncpa [#allocation7], 1 }
 0x688   :  { %1198 = vsyncpa [#allocation7 + $0x1], 1 }

// kernel: tpu_custom_call.1
= control target key start
LH: loop header
LB: loop body
LE: loop exit
PB: predicated region body
PF: predicated region fallthrough
CT: control target
= control target key end

     0   :  { %19 = vsyncpa [#allocation7], 0  ;;  %s1912_s0 = inlined_call_operand.vmem [shape: f32[2,8,32], index: 0, kind: input, shape index: {}]   ;;  %s1913_s1 = inlined_call_operand.vmem [shape: bf16[2,8,32], index: 1, kind: input, shape index: {}]   ;;  %s1914_s2 = inlined_call_operand.vmem [shape: bf16[32,32], index: 2, kind: input, shape index: {}]   ;;  %s1915_s3 = inlined_call_operand.vmem [shape: f32[1,32], index: 3, kind: input, shape index: {}]   ;;  %s1916_s4 = inlined_call_operand.vmem [shape: bf16[32,64], index: 4, kind: input, shape index: {}]   ;;  %s1917_s5 = inlined_call_operand.vmem [shape: f32[1,64], index: 5, kind: input, shape index: {}]   ;;  %s1918_s6 = inlined_call_operand.vmem [shape: f32[1,32], index: 6, kind: input, shape index: {}]   ;;  %s1919_s7 = inlined_call_operand.vmem [shape: f32[1,32], index: 7, kind: input, shape index: {}]   ;;  %s1920_s8 = inlined_call_operand.vmem [shape: bf16[128,32], index: 8, kind: input, shape index: {}]   ;;  %s1921_s9 = inlined_call_operand.vmem [shape: f32[1,128], index: 9, kind: input, shape index: {}]   ;;  %s1922_s10 = inlined_call_operand.vmem [shape: bf16[128,32], index: 10, kind: input, shape index: {}]   ;;  %s1923_s11 = inlined_call_operand.vmem [shape: f32[1,32], index: 11, kind: input, shape index: {}]   ;;  %s1924_s12 = inlined_call_operand.vmem [shape: f32[1,32], index: 12, kind: input, shape index: {}]   ;;  %s1925_s13 = inlined_call_operand.vmem [shape: f32[1,32], index: 13, kind: input, shape index: {}]   ;;  %s1926_s14 = inlined_call_operand.hbm [shape: f32[2,8,32], index: 14, kind: output, shape index: {}]  }
   0x1   :  { %21 = vsyncpa [#allocation7 + $0x1], 0  ;;  %s1654_s29 = smov 0   ;;  %s1656_s30 = smov 0  }
   0x2   :  { %s1658_s15 = smov 0   ;;  %s1660_s16 = smov 0  }
   0x3   :  { %s1662_s17 = smov 0   ;;  %s1664_s18 = smov 0  }
   0x4 LB: > { %1934 = sst [smem:[#allocation9_spill]] %s1546_s29  ;;  %s1261_s19 = sadd.s32 4294967295, %s1566_s18   ;;  %s1566_s18 = sphi %s1664_s18, %s27_s18   ;;  %s1562_s17 = sphi %s1662_s17, %s1949_s17   ;;  %s1558_s16 = sphi %s1660_s16, %s1948_s16   ;;  %s1554_s15 = sphi %s1658_s15, %s1947_s15   ;;  %s1550_s30 = sphi %s1656_s30, %s1951_s30   ;;  %s1546_s29 = sphi %s1654_s29, %s1950_s29  }
   0x5   : > { %1935 = sst [smem:[#allocation10_spill]] %s1554_s15  ;;  %s1262_s20 = sadd.s32 4294967294, %s1566_s18  }
   0x6   : > { %1936 = sst [smem:[#allocation11_spill]] %s1562_s17  ;;  %s39_s21 = sadd.s32 1, %s1562_s17 }
   0x7   : > { %1937 = sst [smem:[#allocation12_spill]] %s1566_s18  ;;  %s354_s22 = sadd.s32 1, %s1554_s15 }
   0x8   : > { %p41_p0 = scmp.ge.s32.totalorder %s39_s21, 2  ;;  %p364_p1 = scmp.ne.s32.totalorder %s1554_s15, %s1550_s30 }
   0x9   : > { %p365_p2 = scmp.eq.s32.totalorder %s1261_s19, 1  ;;  %p370_p3 = scmp.ne.s32.totalorder %s1550_s30, %s1546_s29 }
   0xa   : > { %s1953_s21 = smov (%p41_p0, %s39_s21), 0  ;;  %p371_p5 = scmp.eq.s32.totalorder %s1262_s20, 1 }
   0xb   : > { %1938 = sst [smem:[#allocation13_spill]] %s1953_s21  ;;  %p1694_p4 = por %p365_p2, %p364_p1 }
   0xc   : > { %s349_s24 = ssub.s32 %s1562_s17, %s1953_s21  ;;  %p1265_p6 = scmp.ge.s32.totalorder %s1566_s18, 1 }
   0xd   : > { %p352_p7 = scmp.eq.s32.totalorder %s349_s24, 0  ;;  %p1701_p8 = por %p371_p5, %p370_p3 }
   0xe   : > { %p442_p9 = scmp.lt.s32.totalorder %s1566_s18, 3 }
   0xf   : > { %s1940_s25 = scalar_select %p1701_p8, 1, 0 }
  0x10   : > { %s1707_s26 = scalar_select %p352_p7, %s1554_s15, %s354_s22  }
  0x11   : > { %1941 = sst [smem:[#allocation14_spill]] %s1940_s25  ;;  %p443_p10 = pnand %p1265_p6, %p442_p9 }
  0x12   : > { %1942 = sst [smem:[#allocation15_spill]] %s1707_s26  ;;  %p494_p11 = scmp.lt.s32.totalorder (!%p443_p10), %s1558_s16, 1 }
  0x13   : > { %446 = sbr.rel (%p443_p10) target bundleno = 1650 (0x672), region = 76  ;;  %s1570_s26 = smov (!%p443_p10), 104  }
  0x14   : > { %s1571_s24 = smov (!%p443_p10), 96   ;;  %s1575_s19 = smov (!%p443_p10), 8  }
  0x15   : > { %s1576_s20 = smov (!%p443_p10), 24   ;;  %s1577_s17 = smov (!%p443_p10), 16  }
  0x16   : > { %s491_s21 = sand.u32 (!%p443_p10), 1, %s1550_s30  }
  0x17   : > { %s1266_s25 = sshll.u32 (!%p443_p10), %s491_s21, 3  ;;  %s1162_s15 = scalar_lea.sflag (!%p443_p10), [#allocation7], %s491_s21 }
  0x18   : > { %v1365_v0 = vld [vmem:[%s1916_s4 + $0x8] sm:$0xff]  ;;  %v1364_v2 = vld [vmem:[%s1916_s4] sm:$0xff]  ;;  %s495_s22 = scalar_select %p494_p11, %s1558_s16, 1  ;;  %vm531_vm0 = vcmask 261120   ;;  %vm549_vm1 = vcmask 60416   ;;  %vm657_vm2 = vcmask 64512  }
  0x19   : > { %v1367_v1 = vld [vmem:[%s1914_s2 + $0x8] sm:$0xff]  ;;  %541 = vmatpush.bf16.msra.mxu0 %v1365_v0  ;;  %v1366_v3 = vld [vmem:[%s1914_s2] sm:$0xff]  ;;  %vm797_vm3 = vcmask 1043456   ;;  %vm888_vm4 = vcmask 130112   ;;  %vm894_vm5 = vcmask 195712   ;;  %vm900_vm6 = vcmask 261312  }
  0x1a   : > { %618 = vmatpush.bf16.msra.mxu1 %v1367_v1  ;;  %s1268_s27 = sshll.u32 %s495_s22, 2  ;;  %s1267_s28 = sshll.u32 %s495_s22, 3  ;;  %v1450_v7 = vld [vmem:[%s1917_s5] ss:$0 sm:$0xff] }
  0x1b   : > { %s504_s29 = scalar_lea.vmem %s1913_s1, %s1268_s27  ;;  %s500_s18 = scalar_lea.vmem %s1912_s0, %s1267_s28  ;;  %v1451_v8 = vld [vmem:[%s1915_s3] ss:$0 sm:$0xff] }
  0x1c   : > { %v510_v4 = vld [vmem:[%s504_s29] sm:$0xf]  ;;  %s1568_s29 = smov 112   ;;  %s1572_s22 = smov 88  }
  0x1d   : > { %542 = vmatpush.bf16.msra.mxu0 %v1364_v2  ;;  %v1729_v5 = vld [vmem:[%s500_s18] sm:$0xff]  ;;  %s1569_s18 = smov 120   ;;  %s1573_s27 = smov 80  }
  0x1e   : > { %619 = vmatpush.bf16.msra.mxu1 %v1366_v3  ;;  %v587_v6 = vpack.c.bf16 %v1729_v5, %v1729_v5  ;;  %s1574_s28 = smov 72  }
  0x20   : > { %1277 = vmatmul.msk.bf16.vlgmr.msra.gmra.mxu0 %vm531_vm0, %v510_v4 }
  0x21   : > { %1286 = vmatmul.msk.bf16.vlgmr.msra.gmra.mxu1 %vm531_vm0, %v587_v6 }
  0x9d   : > { %v544_v9 = vpop.f32.mrf.mxu0 }
  0x9e   : > { %v621_v10 = vpop.f32.mrf.mxu1  ;;  %v545_v11 = vadd.f32 %v1450_v7, %v544_v9 }
  0x9f   : > { %v622_v12 = vadd.f32 %v1451_v8, %v621_v10 }
  0xa0   : > { %v1741_v13 = vpack.c.bf16 %v545_v11, %v545_v11 }
  0xa1   : > { %v625_v14 = vmul.f32 0.35355338, %v622_v12 }
  0xa2   : > { %550 = vst.msk [vmem:[#allocation3] sm:$0xf] %vm549_vm1, %v1741_v13  ;;  %566 = vrot.lane.b32.xlu1 %v1741_v13, %s1568_s29  ;;  %556 = vrot.lane.b32.xlu0 %v1741_v13, %s1569_s18 }
  0xa3   : > { %v626_v15 = vpack.c.bf16 %v625_v14, %v625_v14 }
  0xa5   : > { %628 = vst.msk [vmem:[#allocation2] sm:$0xf] %vm549_vm1, %v626_v15  ;;  %635 = vrot.lane.b32.xlu2 %v626_v15, %s1568_s29  ;;  %v546_v16 = vpop.f32.mrf.mxu0  ;;  %s1361_s29 = sshll.u32 %s1558_s16, 3 }
  0xa6   : > { %v623_v17 = vpop.f32.mrf.mxu1 }
  0xa9   : > { %v649_v18 = vld [vmem:[#allocation3] sm:$0xf] }
  0xaa   : > { %576 = vrot.lane.b32.xlu1 %v1741_v13, %s1570_s26  ;;  %v662_v19 = vsel %vm657_vm2, %v649_v18, 0  ;;  %630 = vrot.lane.b32.xlu0 %v626_v15, %s1569_s18 }
  0xab   : > { %671 = vmatpush.bf16.xpose.msrb.mxu0 %v662_v19 }
  0xac   : > { %v645_v20 = vld [vmem:[#allocation2] sm:$0xf] }
  0xad   : > { %640 = vrot.lane.b32.xlu2 %v626_v15, %s1570_s26 }
  0xb2   : > { %552 = vrot.lane.b32.xlu1 %v1741_v13, %s1571_s24  ;;  %1287 = vmatmul.msk.bf16.vlgmr.msrb.gmra.mxu0 %vm657_vm2, %v645_v20 }
  0xba   : > { %561 = vrot.lane.b32.xlu1 %v1741_v13, %s1572_s22 }
  0xff   : > { %v636_v21 = vpop.permute.xlu2 %635 }
 0x100   : > { %639 = vst.msk [vmem:[#allocation2 + $0x8] sm:$0xf] %vm549_vm1, %v636_v21 }
 0x107   : > { %v641_v22 = vpop.permute.xlu2 %640  ;;  %v647_v32 = vld [vmem:[#allocation2 + $0x8] sm:$0xf] }
 0x108   : > { %644 = vst.msk [vmem:[#allocation2 + $0xc] sm:$0xf] %vm549_vm1, %v641_v22 }
 0x10f   : > { %v648_v37 = vld [vmem:[#allocation2 + $0xc] sm:$0xf] }
 0x114   : > { %v567_v23 = vpop.permute.xlu1 %566  ;;  %v557_v24 = vpop.permute.xlu0 %556 }
 0x115   : > { %570 = vst.msk [vmem:[#allocation3 + $0x8] sm:$0xf] %vm549_vm1, %v567_v23 }
 0x116   : > { %560 = vst.msk [vmem:[#allocation3 + $0x4] sm:$0xf] %vm549_vm1, %v557_v24 }
 0x11c   : > { %v577_v25 = vpop.permute.xlu1 %576  ;;  %v651_v26 = vld [vmem:[#allocation3 + $0x8] sm:$0xf]  ;;  %v631_v27 = vpop.permute.xlu0 %630 }
 0x11d   : > { %580 = vst.msk [vmem:[#allocation3 + $0xc] sm:$0xf] %vm549_vm1, %v577_v25  ;;  %v650_v28 = vld [vmem:[#allocation3 + $0x4] sm:$0xf]  ;;  %v700_v29 = vsel %vm657_vm2, %v651_v26, 0 }
 0x11e   : > { %v681_v30 = vsel %vm657_vm2, %v650_v28, 0  ;;  %709 = vmatpush.bf16.xpose.msra.mxu0 %v700_v29  ;;  %634 = vst.msk [vmem:[#allocation2 + $0x4] sm:$0xf] %vm549_vm1, %v631_v27 }
 0x11f   : > { %690 = vmatpush.bf16.xpose.msra.mxu3 %v681_v30 }
 0x124   : > { %v553_v31 = vpop.permute.xlu1 %552  ;;  %v652_v33 = vld [vmem:[#allocation3 + $0xc] sm:$0xf] }
 0x125   : > { %555 = vst.msk [vmem:[#allocation4] sm:$0xf] %vm549_vm1, %v553_v31  ;;  %1289 = vmatmul.msk.bf16.vlgmr.msra.gmra.mxu0 %vm657_vm2, %v647_v32  ;;  %v719_v34 = vsel %vm657_vm2, %v652_v33, 0  ;;  %v646_v35 = vld [vmem:[#allocation2 + $0x4] sm:$0xf] }
 0x126   : > { %728 = vmatpush.bf16.xpose.msrb.mxu1 %v719_v34  ;;  %1288 = vmatmul.msk.bf16.vlgmr.msra.gmra.mxu3 %vm657_vm2, %v646_v35 }
 0x12c   : > { %v562_v36 = vpop.permute.xlu1 %561  ;;  %v653_v38 = vld [vmem:[#allocation4] sm:$0xf] }
 0x12d   : > { %565 = vst.msk [vmem:[#allocation4 + $0x4] sm:$0xf] %vm549_vm1, %v562_v36  ;;  %1290 = vmatmul.msk.bf16.vlgmr.msrb.gmra.mxu1 %vm657_vm2, %v648_v37  ;;  %v799_v39 = vsel %vm797_vm3, %v653_v38, 0 }
 0x12e   : > { %808 = vmatpush.bf16.msra.mxu1 %v799_v39 }
 0x12f   : > { %v673_v40 = vpop.f32.mrf.mxu0 }
 0x130   : > { %v734_v41 = vsel %vm657_vm2, %v673_v40, -inf }
 0x131   : > { %735 = vmax.xlane.f32.xlu0 %v734_v41 }
 0x134   : > { %v654_v42 = vld [vmem:[#allocation4 + $0x4] sm:$0xf] }
 0x135   : > { %v818_v43 = vsel %vm797_vm3, %v654_v42, 0 }
 0x136   : > { %827 = vmatpush.bf16.msrb.mxu3 %v818_v43 }
 0x137   : > { %v675_v44 = vpop.f32.mrf.mxu0 }
 0x145   : > { %571 = vrot.lane.b32.xlu0 %v1741_v13, %s1573_s27  ;;  %s1173_s27 = scalar_lea.hbm %s1926_s14, %s1361_s29 }
 0x1a2   : > { %v711_v45 = vpop.f32.mrf.mxu0 }
 0x1a3   : > { %v740_v46 = vsel %vm657_vm2, %v711_v45, -inf }
 0x1a4   : > { %v736_v47 = vpop.xlane.xlu0 %735  ;;  %741 = vmax.xlane.f32.xlu1 %v740_v46 }
 0x1a5   : > { %v758_v48 = vsub.f32 %v673_v40, %v736_v47  ;;  %v746_v23 = vsub.f32 -inf, %v736_v47 }
 0x1a7   : > { %v762_v49 = vmul.f32 1.442695, %v758_v48  ;;  %v750_v24 = vmul.f32 1.442695, %v746_v23 }
 0x1a9   : > { %v692_v50 = vpop.f32.mrf.mxu3  ;;  %1458 = vpow2.f32 %v762_v49 }
 0x1aa   : > { %v713_v51 = vpop.f32.mrf.mxu0  ;;  %v730_v52 = vpop.f32.mrf.mxu1  ;;  %v737_v56 = vsel %vm657_vm2, %v692_v50, -inf }
 0x1ab   : > { %v743_v53 = vsel %vm657_vm2, %v730_v52, -inf }
 0x1ac   : > { %744 = vmax.xlane.f32.xlu2 %v743_v53 }
 0x1af   : > { %v1459_v54 = vpop.eup %1458 }
 0x1b0   : > { %v790_v55 = vpack.c.bf16 %v1459_v54, %v1459_v54  ;;  %v774_v62 = vsel %vm657_vm2, %v1459_v54, 0.0 }
 0x1b1   : > { %v694_v57 = vpop.f32.mrf.mxu3 }
 0x1b2   : > { %v732_v58 = vpop.f32.mrf.mxu1  ;;  %1291 = vmatmul.msk.bf16.vlgmr.msra.gmra.mxu1 %vm657_vm2, %v790_v55 }
 0x1b4   : > { %738 = vmax.xlane.f32.xlu2 %v737_v56 }
 0x1b7   : > { %v572_v59 = vpop.permute.xlu0 %571 }
 0x1b8   : > { %575 = vst.msk [vmem:[#allocation4 + $0x8] sm:$0xf] %vm549_vm1, %v572_v59 }
 0x1bf   : > { %v655_v60 = vld [vmem:[#allocation4 + $0x8] sm:$0xf] }
 0x1c0   : > { %v837_v61 = vsel %vm797_vm3, %v655_v60, 0 }
 0x1c1   : > { %846 = vmatpush.bf16.msrb.mxu0 %v837_v61 }
 0x1cc   : > { %581 = vrot.lane.b32.xlu2 %v1741_v13, %s1574_s28 }
 0x1f5   : > { %775 = vadd.xlane.f32.xlu2 %v774_v62 }
 0x217   : > { %v742_v63 = vpop.xlane.xlu1 %741 }
 0x218   : > { %v760_v0 = vsub.f32 %v711_v45, %v742_v63  ;;  %v748_v37 = vsub.f32 -inf, %v742_v63 }
 0x21a   : > { %v766_v1 = vmul.f32 1.442695, %v760_v0  ;;  %v754_v39 = vmul.f32 1.442695, %v748_v37 }
 0x21c   : > { %1460 = vpow2.f32 %v766_v1 }
 0x21f   : > { %v745_v2 = vpop.xlane.xlu2 %744 }
 0x220   : > { %v761_v9 = vsub.f32 %v730_v52, %v745_v2  ;;  %v749_v33 = vsub.f32 -inf, %v745_v2 }
 0x222   : > { %v1461_v3 = vpop.eup %1460  ;;  %v768_v11 = vmul.f32 1.442695, %v761_v9  ;;  %v756_v35 = vmul.f32 1.442695, %v749_v33  ;;  %v1375_v9 = vld [vmem:[%s1920_s8 + $0x38] sm:$0xff]  ;;  %v1368_v33 = vld [vmem:[%s1920_s8] sm:$0xff] }
 0x223   : > { %v792_v4 = vpack.c.bf16 %v1461_v3, %v1461_v3  ;;  %v780_v6 = vsel %vm657_vm2, %v1461_v3, 0.0 }
 0x224   : > { %781 = vadd.xlane.f32.xlu0 %v780_v6 }
 0x225   : > { %1293 = vmatmul.msk.bf16.vlgmr.msrb.gmra.mxu0 %vm657_vm2, %v792_v4 }
 0x227   : > { %v739_v7 = vpop.xlane.xlu2 %738 }
 0x228   : > { %v759_v8 = vsub.f32 %v692_v50, %v739_v7  ;;  %v747_v32 = vsub.f32 -inf, %v739_v7 }
 0x22a   : > { %v764_v10 = vmul.f32 1.442695, %v759_v8  ;;  %v752_v34 = vmul.f32 1.442695, %v747_v32  ;;  %v1578_v8 = vmov 32.0  }
 0x22c   : > { %1462 = vpow2.f32 %v764_v10  ;;  %v1029_v10 = vsel %vm531_vm0, %v1375_v9, 0 }
 0x22d   : > { %1464 = vpow2.f32 %v768_v11  ;;  %1031 = vmatpush.bf16.xpose.msra.mxu2 %v1029_v10 }
 0x22e   : > { %1466 = vpow2.f32 %v750_v24 }
 0x22f   : > { %v582_v12 = vpop.permute.xlu2 %581  ;;  %v810_v13 = vpop.f32.mrf.mxu1 }
 0x230   : > { %585 = vst.msk [vmem:[#allocation4 + $0xc] sm:$0xf] %vm549_vm1, %v582_v12  ;;  %v1374_v12 = vld [vmem:[%s1920_s8 + $0x30] sm:$0xff] }
 0x232   : > { %v1463_v14 = vpop.eup %1462 }
 0x233   : > { %v777_v15 = vsel %vm657_vm2, %v1463_v14, 0.0  ;;  %v791_v16 = vpack.c.bf16 %v1463_v14, %v1463_v14  ;;  %v1465_v17 = vpop.eup %1464 }
 0x234   : > { %778 = vadd.xlane.f32.xlu1 %v777_v15  ;;  %v793_v21 = vpack.c.bf16 %v1465_v17, %v1465_v17  ;;  %v783_v22 = vsel %vm657_vm2, %v1465_v17, 0.0  ;;  %v1467_v25 = vpop.eup %1466  ;;  %v1373_v15 = vld [vmem:[%s1920_s8 + $0x28] sm:$0xff] }
 0x235   : > { %1292 = vmatmul.msk.bf16.vlgmr.msrb.gmra.mxu3 %vm657_vm2, %v791_v16  ;;  %v770_v26 = vmul.f32 0.0, %v1467_v25  ;;  %v1023_v17 = vsel %vm531_vm0, %v1373_v15, 0  ;;  %v1371_v25 = vld [vmem:[%s1920_s8 + $0x18] sm:$0xff] }
 0x237   : > { %v656_v18 = vld [vmem:[#allocation4 + $0xc] sm:$0xf]  ;;  %v812_v19 = vpop.f32.mrf.mxu1  ;;  %v871_v29 = vadd.f32 %v810_v13, %v770_v26 }
 0x238   : > { %v856_v20 = vsel %vm797_vm3, %v656_v18, 0  ;;  %v1372_v19 = vld [vmem:[%s1920_s8 + $0x20] sm:$0xff] }
 0x239   : > { %865 = vmatpush.bf16.msrb.mxu1 %v856_v20 }
 0x23c   : > { %1294 = vmatmul.msk.bf16.vlgmr.msrb.gmra.mxu1 %vm657_vm2, %v793_v21  ;;  %784 = vadd.xlane.f32.xlu1 %v783_v22  ;;  %v1020_v22 = vsel %vm531_vm0, %v1372_v19, 0 }
 0x268   : > { %v776_v27 = vpop.xlane.xlu2 %775 }
 0x269   : > { %v786_v28 = vadd.f32 %v776_v27, %v770_v26 }
 0x26b   : > { %1468 = vrcp.f32 %v786_v28  ;;  %v1017_v28 = vsel %vm531_vm0, %v1371_v25, 0 }
 0x26c   : > { %1470 = vpow2.f32 %v752_v34  ;;  %v1008_v34 = vsel %vm531_vm0, %v1368_v33, 0 }
 0x26d   : > { %1472 = vpow2.f32 %v756_v35  ;;  %v1383_v35 = vld [vmem:[%s1922_s10 + $0x38] sm:$0xff] }
 0x26e   : > { %1474 = vpow2.f32 %v754_v39  ;;  %1114 = vmatpush.bf16.msra.mxu3 %v1383_v35 }
 0x271   : > { %v1469_v30 = vpop.eup %1468 }
 0x272   : > { %v879_v31 = vmul.f32 %v1469_v30, %v871_v29  ;;  %v1471_v40 = vpop.eup %1470  ;;  %v1370_v29 = vld [vmem:[%s1920_s8 + $0x10] sm:$0xff] }
 0x273   : > { %v1473_v42 = vpop.eup %1472  ;;  %v771_v43 = vmul.f32 0.0, %v1471_v40  ;;  %v1014_v30 = vsel %vm531_vm0, %v1370_v29, 0  ;;  %v1381_v40 = vld [vmem:[%s1922_s10 + $0x28] sm:$0xff] }
 0x274   : > { %883 = vst.msk [vmem:[#allocation5] sm:$0xff] %vm657_vm2, %v879_v31  ;;  %v773_v44 = vmul.f32 0.0, %v1473_v42  ;;  %v1475_v48 = vpop.eup %1474  ;;  %v1369_v31 = vld [vmem:[%s1920_s8 + $0x8] sm:$0xff] }
 0x275   : > { %v772_v50 = vmul.f32 0.0, %v1475_v48  ;;  %v1011_v32 = vsel %vm531_vm0, %v1369_v31, 0 }
 0x297   : > { %v782_v49 = vpop.xlane.xlu0 %781 }
 0x298   : > { %v788_v51 = vadd.f32 %v782_v49, %v772_v50 }
 0x2a2   : > { %v848_v36 = vpop.f32.mrf.mxu0 }
 0x2a3   : > { %v873_v60 = vadd.f32 %v848_v36, %v772_v50  ;;  %v1452_v50 = vld [vmem:[%s1918_s6] ss:$0 sm:$0xff] }
 0x2a7   : > { %v779_v38 = vpop.xlane.xlu1 %778 }
 0x2a8   : > { %v787_v45 = vadd.f32 %v779_v38, %v771_v43  ;;  %v1382_v38 = vld [vmem:[%s1922_s10 + $0x30] sm:$0xff] }
 0x2a9   : > { %1115 = vmatpush.bf16.msra.mxu3 %v1382_v38 }
 0x2aa   : > { %v850_v41 = vpop.f32.mrf.mxu0  ;;  %1476 = vrcp.f32 %v787_v45 }
 0x2ab   : > { %v1380_v41 = vld [vmem:[%s1922_s10 + $0x20] sm:$0xff] }
 0x2ad   : > { %1116 = vmatpush.bf16.msra.mxu3 %v1381_v40 }
 0x2af   : > { %v785_v46 = vpop.xlane.xlu1 %784 }
 0x2b0   : > { %v789_v47 = vadd.f32 %v785_v46, %v773_v44  ;;  %v1477_v54 = vpop.eup %1476 }
 0x2b1   : > { %1117 = vmatpush.bf16.msra.mxu3 %v1380_v41 }
 0x2b2   : > { %1478 = vrcp.f32 %v789_v47  ;;  %v1378_v47 = vld [vmem:[%s1922_s10 + $0x10] sm:$0xff] }
 0x2b3   : > { %1480 = vrcp.f32 %v788_v51 }
 0x2b4   : > { %1482 = vrcp.f32 %v1578_v8 }
 0x2b8   : > { %v829_v52 = vpop.f32.mrf.mxu3  ;;  %v1479_v57 = vpop.eup %1478 }
 0x2b9   : > { %v867_v53 = vpop.f32.mrf.mxu1  ;;  %v872_v55 = vadd.f32 %v829_v52, %v771_v43  ;;  %v1481_v63 = vpop.eup %1480 }
 0x2ba   : > { %v874_v56 = vadd.f32 %v867_v53, %v773_v44  ;;  %v881_v0 = vmul.f32 %v1481_v63, %v873_v60  ;;  %v1483_v11 = vpop.eup %1482  ;;  %v1379_v44 = vld [vmem:[%s1922_s10 + $0x18] sm:$0xff]  ;;  %v1453_v53 = vld [vmem:[%s1919_s7] ss:$0 sm:$0xff] }
 0x2bb   : > { %v880_v58 = vmul.f32 %v1477_v54, %v872_v55  ;;  %v910_v13 = vmul.f32 32.0, %v1483_v11  ;;  %vm914_vm7 = vweird.f32 %v1483_v11  ;;  %1118 = vmatpush.bf16.msra.mxu3 %v1379_v44 }
 0x2bc   : > { %v882_v59 = vmul.f32 %v1479_v57, %v874_v56  ;;  %v1377_v57 = vld [vmem:[%s1922_s10 + $0x8] sm:$0xff] }
 0x2bd   : > { %885 = vrot.lane.b32.xlu1 %v880_v58, %s1575_s19  ;;  %v911_v14 = vsub.f32 1.0, %v910_v13  ;;  %v1376_v58 = vld [vmem:[%s1922_s10] sm:$0xff] }
 0x2be   : > { %897 = vrot.lane.b32.xlu0 %v882_v59, %s1576_s20  ;;  %v1454_v59 = vld [vmem:[%s1921_s9] ss:$0 sm:$0xff]  ;;  %s493_s20 = scalar_lea.vmem [#allocation6], %s1266_s25  ;;  %s1508_s25 = scalar_lea.hbm %s1926_s14, 16 }
 0x2bf   : > { %v912_v16 = vmul.f32 %v1483_v11, %v911_v14  ;;  %1119 = vmatpush.bf16.msra.mxu3 %v1378_v47  ;;  %s1175_s16 = sshll.u32 %s493_s20, 4  ;;  %s1176_s16 = int_to_ptr.vmem [resolvable:$true] %s1175_s16 }
 0x2c0   : > { %v831_v61 = vpop.f32.mrf.mxu3 }
 0x2c1   : > { %v869_v62 = vpop.f32.mrf.mxu1  ;;  %v913_v18 = vadd.f32 %v1483_v11, %v912_v16 }
 0x2c3   : > { %v1805_v20 = vsel %vm914_vm7, %v1483_v11, %v913_v18  ;;  %1120 = vmatpush.bf16.msra.mxu3 %v1377_v57 }
 0x2c5   : > { %891 = vrot.lane.b32.xlu1 %v881_v0, %s1577_s17  ;;  %s1177_s17 = sshll.u32 %s1173_s27, 4  ;;  %s1178_s17 = int_to_ptr.hbm [resolvable:$true] %s1177_s17 }
 0x2c6   : > { %s1502_s18 = sshra.s32 %s1178_s17, 4  ;;  %s1503_s18 = int_to_ptr.hbm [resolvable:$true] %s1502_s18 }
 0x2c7   : > { %1121 = vmatpush.bf16.msra.mxu3 %v1376_v58  ;;  %s1504_s29 = scalar_lea.hbm %s1503_s18, 8  ;;  %p1509_p1 = scmp.lt.s32.totalorder %s1503_s18, %s1926_s14 }
 0x2c8   : > { %p1505_p12 = scmp.ne.s32.totalorder %s1503_s18, %s1504_s29  ;;  %p1510_p2 = scmp.lt.s32.totalorder %s1508_s25, %s1504_s29 }
 0x2ca   : > { %p1506_p13 = pnand %p1505_p12, %p1694_p4  ;;  %p1511_p3 = por %p1510_p2, %p1509_p1 }
 0x2cc   : > { %p1507_p0 = pneg %p1506_p13 }
 0x2ce   : > { %p1512_p5 = pnand %p1511_p3, %p1507_p0 }
 0x32f   : > { %v886_v1 = vpop.permute.xlu1 %885 }
 0x330   : > { %889 = vst.msk [vmem:[#allocation5] sm:$0xff] %vm888_vm4, %v886_v1  ;;  %v898_v3 = vpop.permute.xlu0 %897  ;;  %v1455_v1 = vld [vmem:[%s1923_s11] ss:$0 sm:$0xff] }
 0x337   : > { %v892_v2 = vpop.permute.xlu1 %891 }
 0x338   : > { %895 = vst.msk [vmem:[#allocation5] sm:$0xff] %vm894_vm5, %v892_v2 }
 0x339   : > { %901 = vst.msk [vmem:[#allocation5] sm:$0xff] %vm900_vm6, %v898_v3 }
 0x340   : > { %v902_v4 = vld [vmem:[#allocation5] sm:$0xff] }
 0x341   : > { %v903_v6 = vadd.f32 %v902_v4, %v1729_v5  ;;  %v1026_v5 = vsel %vm531_vm0, %v1374_v12, 0 }
 0x342   : > { %1032 = vmatpush.bf16.xpose.msra.mxu2 %v1026_v5 }
 0x343   : > { %v906_v7 = vsel %vm531_vm0, %v903_v6, 0.0 }
 0x344   : > { %907 = vadd.xlane.f32.xlu1 %v906_v7 }
 0x34a   : > { %1033 = vmatpush.bf16.xpose.msra.mxu2 %v1023_v17 }
 0x352   : > { %1034 = vmatpush.bf16.xpose.msra.mxu2 %v1020_v22  ;;  %v1456_v22 = vld [vmem:[%s1924_s12] ss:$0 sm:$0xff] }
 0x35a   : > { %1035 = vmatpush.bf16.xpose.msra.mxu2 %v1017_v28 }
 0x362   : > { %1036 = vmatpush.bf16.xpose.msra.mxu2 %v1014_v30 }
 0x36a   : > { %1037 = vmatpush.bf16.xpose.msra.mxu2 %v1011_v32 }
 0x372   : > { %1038 = vmatpush.bf16.xpose.msra.mxu2 %v1008_v34 }
 0x3b7   : > { %v908_v21 = vpop.xlane.xlu1 %907 }
 0x3b8   : > { %v916_v23 = vmul.f32 %v1805_v20, %v908_v21 }
 0x3ba   : > { %v917_v24 = vsub.f32 %v903_v6, %v916_v23 }
 0x3bc   : > { %v918_v26 = vmul.f32 %v917_v24, %v917_v24 }
 0x3be   : > { %v919_v27 = vsel %vm531_vm0, %v918_v26, 0.0 }
 0x3bf   : > { %920 = vadd.xlane.f32.xlu2 %v919_v27 }
 0x432   : > { %v921_v36 = vpop.xlane.xlu2 %920 }
 0x433   : > { %v922_v37 = vmul.f32 %v921_v36, %v1805_v20 }
 0x435   : > { %v923_v39 = vadd.f32 1e-05, %v922_v37 }
 0x437   : > { %1484 = vrsqrt.f32 %v923_v39  ;;  %vm930_vm9 = vweird.f32 %v923_v39 }
 0x43d   : > { %v1485_v42 = vpop.eup %1484 }
 0x43e   : > { %v925_v43 = vmul.f32 %v1485_v42, %v923_v39  ;;  %vm931_vm8 = vweird.f32 %v1485_v42 }
 0x43f   : > { %vm932_vm10 = vmor %vm930_vm9, %vm931_vm8 }
 0x440   : > { %v926_v45 = vmul.f32 %v1485_v42, %v925_v43 }
 0x442   : > { %v927_v46 = vmul.f32 0.5, %v926_v45 }
 0x444   : > { %v928_v48 = vsub.f32 1.5, %v927_v46 }
 0x446   : > { %v929_v49 = vmul.f32 %v1485_v42, %v928_v48 }
 0x448   : > { %v933_v51 = vsel %vm932_vm10, %v1485_v42, %v929_v49 }
 0x449   : > { %v934_v52 = vmul.f32 %v933_v51, %v917_v24  ;;  %v1457_v24 = vld [vmem:[%s1925_s13] ss:$0 sm:$0xff] }
 0x44b   : > { %v938_v54 = vmul.f32 %v1452_v50, %v934_v52 }
 0x44d   : > { %v942_v55 = vadd.f32 %v1453_v53, %v938_v54 }
 0x44f   : > { %v943_v56 = vpack.c.bf16 %v942_v55, %v942_v55 }
 0x451   : > { %1327 = vmatmul.msk.bf16.vlgmr.msra.gmra.mxu2 %vm531_vm0, %v943_v56 }
 0x4d4   : > { %v1040_v60 = vpop.f32.mrf.mxu2 }
 0x4d5   : > { %v1041_v61 = vadd.f32 %v1454_v59, %v1040_v60 }
 0x4d7   : > { %v1044_v62 = vmax.f32 %v1041_v61, 0.0 }
 0x4d9   : > { %v1061_v63 = vpack.c.bf16 %v1044_v62, %v1044_v62 }
 0x4db   : > { %1122 = vmatmul.bf16.vlgmr.msra.gmra.mxu3 %v1061_v63 }
 0x4dc   : > { %v1042_v0 = vpop.f32.mrf.mxu2 }
 0x55e   : > { %v1123_v2 = vpop.f32.mrf.mxu3 }
 0x55f   : > { %v1124_v3 = vadd.f32 %v1455_v1, %v1123_v2 }
 0x561   : > { %v1127_v4 = vadd.f32 %v1124_v3, %v942_v55 }
 0x563   : > { %v1130_v6 = vsel %vm531_vm0, %v1127_v4, 0.0 }
 0x564   : > { %1131 = vadd.xlane.f32.xlu2 %v1130_v6 }
 0x566   : > { %v1125_v7 = vpop.f32.mrf.mxu3 }
 0x5d7   : > { %v1132_v8 = vpop.xlane.xlu2 %1131 }
 0x5d8   : > { %v1133_v9 = vmul.f32 %v1132_v8, %v1805_v20 }
 0x5da   : > { %v1134_v10 = vsub.f32 %v1127_v4, %v1133_v9 }
 0x5dc   : > { %v1135_v11 = vmul.f32 %v1134_v10, %v1134_v10 }
 0x5de   : > { %v1136_v12 = vsel %vm531_vm0, %v1135_v11, 0.0 }
 0x5df   : > { %1137 = vadd.xlane.f32.xlu0 %v1136_v12 }
 0x652   : > { %v1138_v13 = vpop.xlane.xlu0 %1137 }
 0x653   : > { %v1139_v5 = vmul.f32 %v1138_v13, %v1805_v20 }
 0x655   : > { %v1140_v14 = vadd.f32 1e-05, %v1139_v5 }
 0x657   : > { %1486 = vrsqrt.f32 %v1140_v14  ;;  %vm1147_vm12 = vweird.f32 %v1140_v14 }
 0x65d   : > { %v1487_v15 = vpop.eup %1486 }
 0x65e   : > { %v1142_v16 = vmul.f32 %v1487_v15, %v1140_v14  ;;  %vm1148_vm11 = vweird.f32 %v1487_v15 }
 0x65f   : > { %vm1149_vm13 = vmor %vm1147_vm12, %vm1148_vm11 }
 0x660   : > { %v1143_v17 = vmul.f32 %v1487_v15, %v1142_v16 }
 0x662   : > { %v1144_v18 = vmul.f32 0.5, %v1143_v17 }
 0x664   : > { %v1145_v19 = vsub.f32 1.5, %v1144_v18 }
 0x666   : > { %v1146_v21 = vmul.f32 %v1487_v15, %v1145_v19 }
 0x668   : > { %v1150_v20 = vsel %vm1149_vm13, %v1487_v15, %v1146_v21 }
 0x669   : > { %v1151_v23 = vmul.f32 %v1150_v20, %v1134_v10 }
 0x66b   : > { %v1155_v25 = vmul.f32 %v1456_v22, %v1151_v23 }
 0x66d   : > { %v1159_v26 = vadd.f32 %v1457_v24, %v1155_v25 }
 0x66f   : > { %1160 = vst.msk [vmem:[%s493_s20] sm:$0xff] %vm531_vm0, %v1159_v26 }
 0x670   : > { %1515 = shalt.err (!%p1512_p5)
}
 0x671   : > { %1384 = dma.vmem_to_hbm [thread:$0]  (%p1694_p4), %s1176_s16, 128, %s1178_s17, %s1162_s15  }
 0x672 PF: > { %s1943_s21 = sld [smem:[#allocation12_spill]] }
 0x673   : > { %s1944_s28 = sld [smem:[#allocation9_spill]] }
 0x678   : > { %p1390_p6 = scmp.ge.s32.totalorder %s1943_s21, 2 }
 0x679   : > { %s1189_s20 = sand.u32 1, %s1944_s28  }
 0x67a   : > { %p1387_p7 = pnand %p1390_p6, %p1701_p8  ;;  %s1190_s26 = scalar_lea.sflag [#allocation7], %s1189_s20 }
 0x67c   : > { %p1388_p9 = pneg %p1387_p7 }
 0x67e   : > { %1541 = dma.done.wait (%p1388_p9), %s1190_s26, 128  }
 0x67f   : > { %1543 = vsyncadd (%p1388_p9), %s1190_s26, 4294967168  ;;  %s27_s18 = sadd.s32 1, %s1943_s21   ;;  %s1946_s24 = sld [smem:[#allocation10_spill]] }
 0x680   : > { %p24_p10 = scmp.ge.s32.totalorder %s27_s18, 4   ;;  %s1947_s15 = sld [smem:[#allocation15_spill]] }
 0x681   : > { %s1948_s16 = sld [smem:[#allocation11_spill]]  ;;  %s1950_s29 = smov %s1550_s30 }
 0x682   : > { %s1949_s17 = sld [smem:[#allocation13_spill]]  ;;  %26 = sbr.rel (!%p24_p10) target bundleno = 4 (0x4), region = 127 }
 0x685   : > { %s1951_s30 = smov %s1946_s24 }
 0x687   :  { %1196 = vsyncpa [#allocation7], 1 }
 0x688   :  { %1198 = vsyncpa [#allocation7 + $0x1], 1 }

</bundles_post_ra>
